<compile_context>
chip_gen: v5e
topology: v5e:2x2
jax: 0.10.0
libtpu: 0.0.40
codegen_flags: <defaults>
</compile_context>

<pallas_src>
import jax
import jax.numpy as jnp
import numpy as np
from jax import lax
from jax.experimental import pallas as pl
from jax.experimental.pallas import tpu as pltpu


# ------------------------- Pallas kernel -------------------------

def _lstm_cls_kernel(x_ref,                  # (T*B, E)   time-major input rows
                     wih0_ref, b0_ref,       # (E, 4H), (1, 4H)  layer-0 input proj (i/f/o cols pre-scaled 0.5)
                     wf_ref, b1_ref,         # (2H, 8H), (1, 4H) wavefront-fused recurrent weight
                     wfc_ref, bfc_ref,       # (H, Cp), (1, Cp)  classifier head (lane-padded)
                     out_ref,                # (B, Cp) logits (padded)
                     gx_ref):                # VMEM scratch (T*B, 4H)
    B = out_ref.shape[0]
    TB = x_ref.shape[0]
    T = TB // B
    H = wf_ref.shape[0] // 2
    G = 4 * H

    # ---- layer-0 input projection, hoisted off the recurrence chain ----
    # one (T*B, E) @ (E, 4H) matmul; bias folded in; parked in VMEM scratch so
    # only one (B, 4H) slice is live per step.
    gx_ref[...] = (jnp.dot(x_ref[...], wih0_ref[...],
                           preferred_element_type=jnp.float32)
                   + b0_ref[...])

    # gate-type lane mask: g-gate lanes [2H, 3H) use plain tanh; i/f/o lanes use
    # sigmoid recovered from the same tanh pass (0.5 scale folded into weights).
    lane = lax.broadcasted_iota(jnp.int32, (B, G), 1)
    g_mask = (lane >= 2 * H) & (lane < 3 * H)

    def activate(pre):                       # (B, 4H), single EUP pass
        t = jnp.tanh(pre)
        return jnp.where(g_mask, t, 0.5 * t + 0.5)

    wf = wf_ref[...]                         # (2H, 8H) resident across the loop
    b1 = b1_ref[...]

    # state
    gates0 = gx_ref[pl.ds(0, B), :]          # pre-activation of layer 0, step 0 (h0(-1)=0)
    c0 = jnp.zeros((B, H), jnp.float32)
    c1 = jnp.zeros((B, H), jnp.float32)
    h1 = jnp.zeros((B, H), jnp.float32)

    # fully-unrolled time loop; one fused MXU round trip per step.
    for t in range(T):
        # ---- layer 0, step t ----
        a0 = activate(gates0)
        i0, f0 = a0[:, 0:H], a0[:, H:2 * H]
        g0, o0 = a0[:, 2 * H:3 * H], a0[:, 3 * H:G]
        c0 = f0 * c0 + i0 * g0
        h0 = o0 * jnp.tanh(c0)

        # ---- wavefront-fused matmul ----
        #   cols [0:4H)  -> gates1(t)               ( [wih1 ; whh1] )
        #   cols [4H:8H) -> recurrent part of gates0(t+1)  ( [whh0 ; 0] )
        fused = jnp.dot(jnp.concatenate([h0, h1], axis=1), wf,
                        preferred_element_type=jnp.float32)        # (B, 8H)

        # ---- layer 1, step t ----
        a1 = activate(fused[:, 0:G] + b1)
        i1, f1 = a1[:, 0:H], a1[:, H:2 * H]
        g1, o1 = a1[:, 2 * H:3 * H], a1[:, 3 * H:G]
        c1 = f1 * c1 + i1 * g1
        h1 = o1 * jnp.tanh(c1)

        # ---- layer-0 pre-activation for step t+1 ----
        if t + 1 < T:
            gates0 = gx_ref[pl.ds((t + 1) * B, B), :] + fused[:, G:2 * G]

    # ---- classifier head on the last hidden state (lane-dense 128-wide) ----
    logits = (jnp.dot(h1, wfc_ref[...], preferred_element_type=jnp.float32)
              + bfc_ref[...])
    out_ref[...] = logits.astype(out_ref.dtype)


# ------------------------- wrapper -------------------------

def lstm_classifier_pallas(x, params):
    """x: (B, T, E) float32  ->  logits (B, C) float32."""
    B, T, E = x.shape
    H = params["whh0"].shape[0]
    C = params["wfc"].shape[1]
    G = 4 * H
    Cp = 128                                   # lane-dense classifier output

    # fold the sigmoid-via-tanh half scale into i/f/o gate columns (not g)
    col_scale = jnp.concatenate([jnp.full((2 * H,), 0.5, jnp.float32),
                                 jnp.ones((H,), jnp.float32),
                                 jnp.full((H,), 0.5, jnp.float32)])

    def scale_ifo(w):
        return w * col_scale

    wih0 = scale_ifo(params["wih0"])           # (E, 4H)
    b0 = scale_ifo(params["b0"])               # (1, 4H)
    whh0 = scale_ifo(params["whh0"])           # (H, 4H)
    wih1 = scale_ifo(params["wih1"])           # (H, 4H)
    whh1 = scale_ifo(params["whh1"])           # (H, 4H)
    b1 = scale_ifo(params["b1"])               # (1, 4H)

    # wavefront-fused recurrent weight (2H, 8H):
    #   [h0(t) | h1(t-1)] @ wf = [ gates1(t) | h0(t) @ whh0 ]
    wf = jnp.concatenate(
        [jnp.concatenate([wih1, whh0], axis=1),
         jnp.concatenate([whh1, jnp.zeros((H, G), jnp.float32)], axis=1)],
        axis=0)

    # lane-padded classifier head
    wfc = jnp.zeros((H, Cp), jnp.float32).at[:, :C].set(params["wfc"])
    bfc = jnp.zeros((1, Cp), jnp.float32).at[:, :C].set(params["bfc"])

    # time-major row layout: rows [t*B : (t+1)*B] are timestep t
    x2d = jnp.transpose(x, (1, 0, 2)).reshape(T * B, E)

    vmem = pl.BlockSpec(memory_space=pltpu.MemorySpace.VMEM)
    out = pl.pallas_call(
        _lstm_cls_kernel,
        out_shape=jax.ShapeDtypeStruct((B, Cp), jnp.float32),
        in_specs=[vmem] * 7,
        out_specs=vmem,
        scratch_shapes=[pltpu.VMEM((T * B, G), jnp.float32)],
    )(x2d, wih0, b0, wf, b1, wfc, bfc)
    return out[:, :C]


# ------------------------- pure-JAX reference -------------------------

def lstm_classifier_ref(x, params):
    B, T, E = x.shape
    H = params["whh0"].shape[0]

    def cell(carry, x_t, wih, whh, b):
        h, c = carry
        gates = x_t @ wih + h @ whh + b
        i = jax.nn.sigmoid(gates[:, 0 * H:1 * H])
        f = jax.nn.sigmoid(gates[:, 1 * H:2 * H])
        g = jnp.tanh(gates[:, 2 * H:3 * H])
        o = jax.nn.sigmoid(gates[:, 3 * H:4 * H])
        c_new = f * c + i * g
        h_new = o * jnp.tanh(c_new)
        return (h_new, c_new), h_new

    def scan_body(carry, x_t):
        (h0, c0), (h1, c1) = carry
        (h0, c0), y0 = cell((h0, c0), x_t, params["wih0"], params["whh0"],
                            params["b0"][0])
        (h1, c1), y1 = cell((h1, c1), y0, params["wih1"], params["whh1"],
                            params["b1"][0])
        return ((h0, c0), (h1, c1)), y1

    zeros = jnp.zeros((B, H), jnp.float32)
    carry0 = ((zeros, zeros), (zeros, zeros))
    _, ys = lax.scan(scan_body, carry0, jnp.transpose(x, (1, 0, 2)))
    h_last = ys[-1]                                  # (B, H)
    return h_last @ params["wfc"] + params["bfc"][0]


# ------------------------- param init (deterministic) -------------------------

def init_params(key, enc_in, hidden, class_num):
    # PyTorch LSTM/Linear init: U(-1/sqrt(H), 1/sqrt(H))
    bound = 1.0 / np.sqrt(hidden)
    keys = jax.random.split(key, 12)
    u = lambda k, shape: jax.random.uniform(k, shape, jnp.float32, -bound, bound)
    params = {
        # layer 0 (input size = enc_in)
        "wih0": u(keys[0], (enc_in, 4 * hidden)),
        "whh0": u(keys[1], (hidden, 4 * hidden)),
        "b0":   (u(keys[2], (1, 4 * hidden)) + u(keys[3], (1, 4 * hidden))),  # b_ih + b_hh
        # layer 1 (input size = hidden)
        "wih1": u(keys[4], (hidden, 4 * hidden)),
        "whh1": u(keys[5], (hidden, 4 * hidden)),
        "b1":   (u(keys[6], (1, 4 * hidden)) + u(keys[7], (1, 4 * hidden))),
        # classifier head
        "wfc":  u(keys[8], (hidden, class_num)),
        "bfc":  u(keys[9], (1, class_num)),
    }
    return params


# ------------------------- main -------------------------

if __name__ == "__main__":
    # configs: enc_in=4, seq_len=8, d_model=32, e_layers=2, class_num=4, batch=8
    B, T, E, H, C = 8, 8, 4, 32, 4

    key = jax.random.PRNGKey(0)
    kx, kp = jax.random.split(key)
    x = jax.random.normal(kx, (B, T, E), jnp.float32)
    params = init_params(kp, E, H, C)

    logits = lstm_classifier_pallas(x, params)
    logits = jax.block_until_ready(logits)

    ref = lstm_classifier_ref(x, params)
    np.testing.assert_allclose(np.asarray(logits), np.asarray(ref),
                               rtol=1e-5, atol=5e-5)

    print("KERNEL_OK")
</pallas_src>

<mosaic_0001>
module attributes {stable_mosaic.version = 11 : i64} {
  func.func @_lstm_cls_kernel(%arg0: memref<64x4xf32, #tpu.memory_space<vmem>>, %arg1: memref<4x128xf32, #tpu.memory_space<vmem>>, %arg2: memref<1x128xf32, #tpu.memory_space<vmem>>, %arg3: memref<64x256xf32, #tpu.memory_space<vmem>>, %arg4: memref<1x128xf32, #tpu.memory_space<vmem>>, %arg5: memref<32x128xf32, #tpu.memory_space<vmem>>, %arg6: memref<1x128xf32, #tpu.memory_space<vmem>>, %arg7: memref<8x128xf32, #tpu.memory_space<vmem>>, %arg8: memref<64x128xf32, #tpu.memory_space<vmem>>) attributes {dimension_semantics = [], scalar_prefetch = 0 : i64, scratch_operands = 1 : i64, tpu.core_type = #tpu.core_type<tc>} {
    %c0 = arith.constant 0 : index
    %c0_0 = arith.constant 0 : index
    %0 = vector.load %arg0[%c0, %c0_0] : memref<64x4xf32, #tpu.memory_space<vmem>>, vector<64x4xf32>
    %c0_1 = arith.constant 0 : index
    %c0_2 = arith.constant 0 : index
    %1 = vector.load %arg1[%c0_1, %c0_2] : memref<4x128xf32, #tpu.memory_space<vmem>>, vector<4x128xf32>
    %cst = arith.constant dense<0.000000e+00> : vector<64x128xf32>
    %2 = tpu.matmul %0, %1, %cst {dimension_numbers = #tpu.dot_dimension_numbers<[1], [0], [0], [1], [0, 0, 1, 1], [], []>} : vector<64x4xf32>, vector<4x128xf32>, vector<64x128xf32> -> vector<64x128xf32>
    %c0_3 = arith.constant 0 : index
    %c0_4 = arith.constant 0 : index
    %3 = vector.load %arg2[%c0_3, %c0_4] : memref<1x128xf32, #tpu.memory_space<vmem>>, vector<1x128xf32>
    %4 = vector.broadcast %3 : vector<1x128xf32> to vector<64x128xf32>
    %5 = arith.addf %2, %4 : vector<64x128xf32>
    %c0_5 = arith.constant 0 : index
    %c0_6 = arith.constant 0 : index
    %6 = vector.load %arg8[%c0_5, %c0_6] : memref<64x128xf32, #tpu.memory_space<vmem>>, vector<64x128xf32>
    tpu.vector_store %arg8[%c0_5, %c0_6], %5 {strides = array<i32>} : memref<64x128xf32, #tpu.memory_space<vmem>>, vector<64x128xf32>,
    %7 = tpu.iota {dimensions = array<i32: 1>} : vector<8x128xi32>
    %c64_i32 = arith.constant 64 : i32
    %8 = vector.broadcast %c64_i32 : i32 to vector<8x128xi32>
    %9 = arith.cmpi sge, %7, %8 : vector<8x128xi32>
    %c96_i32 = arith.constant 96 : i32
    %10 = vector.broadcast %c96_i32 : i32 to vector<8x128xi32>
    %11 = arith.cmpi slt, %7, %10 : vector<8x128xi32>
    %12 = arith.andi %9, %11 : vector<8x128xi1>
    %c0_7 = arith.constant 0 : index
    %c0_8 = arith.constant 0 : index
    %13 = vector.load %arg3[%c0_7, %c0_8] : memref<64x256xf32, #tpu.memory_space<vmem>>, vector<64x256xf32>
    %c0_9 = arith.constant 0 : index
    %c0_10 = arith.constant 0 : index
    %14 = vector.load %arg4[%c0_9, %c0_10] : memref<1x128xf32, #tpu.memory_space<vmem>>, vector<1x128xf32>
    %c0_11 = arith.constant 0 : index
    %c0_12 = arith.constant 0 : index
    %15 = vector.load %arg8[%c0_11, %c0_12] : memref<64x128xf32, #tpu.memory_space<vmem>>, vector<8x128xf32>
    %cst_13 = arith.constant 0.000000e+00 : f32
    %16 = vector.broadcast %cst_13 : f32 to vector<8x32xf32>
    %cst_14 = arith.constant 0.000000e+00 : f32
    %17 = vector.broadcast %cst_14 : f32 to vector<8x32xf32>
    %cst_15 = arith.constant 0.000000e+00 : f32
    %18 = vector.broadcast %cst_15 : f32 to vector<8x32xf32>
    %19 = math.tanh %15 : vector<8x128xf32>
    %cst_16 = arith.constant 5.000000e-01 : f32
    %20 = vector.broadcast %cst_16 : f32 to vector<8x128xf32>
    %21 = arith.mulf %20, %19 : vector<8x128xf32>
    %cst_17 = arith.constant 5.000000e-01 : f32
    %22 = vector.broadcast %cst_17 : f32 to vector<8x128xf32>
    %23 = arith.addf %21, %22 : vector<8x128xf32>
    %24 = arith.select %12, %19, %23 : vector<8x128xi1>, vector<8x128xf32>
    %25 = vector.extract_strided_slice %24 {offsets = [0, 0], sizes = [8, 32], strides = [1, 1]} : vector<8x128xf32> to vector<8x32xf32>
    %26 = vector.extract_strided_slice %24 {offsets = [0, 32], sizes = [8, 32], strides = [1, 1]} : vector<8x128xf32> to vector<8x32xf32>
    %27 = vector.extract_strided_slice %24 {offsets = [0, 64], sizes = [8, 32], strides = [1, 1]} : vector<8x128xf32> to vector<8x32xf32>
    %28 = vector.extract_strided_slice %24 {offsets = [0, 96], sizes = [8, 32], strides = [1, 1]} : vector<8x128xf32> to vector<8x32xf32>
    %29 = arith.mulf %26, %16 : vector<8x32xf32>
    %30 = arith.mulf %25, %27 : vector<8x32xf32>
    %31 = arith.addf %29, %30 : vector<8x32xf32>
    %32 = math.tanh %31 : vector<8x32xf32>
    %33 = arith.mulf %28, %32 : vector<8x32xf32>
    %34 = tpu.concatenate %33, %18 in 1 : vector<8x32xf32>, vector<8x32xf32> -> vector<8x64xf32>
    %cst_18 = arith.constant dense<0.000000e+00> : vector<8x256xf32>
    %35 = tpu.matmul %34, %13, %cst_18 {dimension_numbers = #tpu.dot_dimension_numbers<[1], [0], [0], [1], [0, 0, 1, 1], [], []>} : vector<8x64xf32>, vector<64x256xf32>, vector<8x256xf32> -> vector<8x256xf32>
    %36 = vector.extract_strided_slice %35 {offsets = [0, 0], sizes = [8, 128], strides = [1, 1]} : vector<8x256xf32> to vector<8x128xf32>
    %37 = vector.broadcast %14 : vector<1x128xf32> to vector<8x128xf32>
    %38 = arith.addf %36, %37 : vector<8x128xf32>
    %39 = math.tanh %38 : vector<8x128xf32>
    %cst_19 = arith.constant 5.000000e-01 : f32
    %40 = vector.broadcast %cst_19 : f32 to vector<8x128xf32>
    %41 = arith.mulf %40, %39 : vector<8x128xf32>
    %cst_20 = arith.constant 5.000000e-01 : f32
    %42 = vector.broadcast %cst_20 : f32 to vector<8x128xf32>
    %43 = arith.addf %41, %42 : vector<8x128xf32>
    %44 = arith.select %12, %39, %43 : vector<8x128xi1>, vector<8x128xf32>
    %45 = vector.extract_strided_slice %44 {offsets = [0, 0], sizes = [8, 32], strides = [1, 1]} : vector<8x128xf32> to vector<8x32xf32>
    %46 = vector.extract_strided_slice %44 {offsets = [0, 32], sizes = [8, 32], strides = [1, 1]} : vector<8x128xf32> to vector<8x32xf32>
    %47 = vector.extract_strided_slice %44 {offsets = [0, 64], sizes = [8, 32], strides = [1, 1]} : vector<8x128xf32> to vector<8x32xf32>
    %48 = vector.extract_strided_slice %44 {offsets = [0, 96], sizes = [8, 32], strides = [1, 1]} : vector<8x128xf32> to vector<8x32xf32>
    %49 = arith.mulf %46, %17 : vector<8x32xf32>
    %50 = arith.mulf %45, %47 : vector<8x32xf32>
    %51 = arith.addf %49, %50 : vector<8x32xf32>
    %52 = math.tanh %51 : vector<8x32xf32>
    %53 = arith.mulf %48, %52 : vector<8x32xf32>
    %c8 = arith.constant 8 : index
    %c0_21 = arith.constant 0 : index
    %54 = vector.load %arg8[%c8, %c0_21] : memref<64x128xf32, #tpu.memory_space<vmem>>, vector<8x128xf32>
    %55 = vector.extract_strided_slice %35 {offsets = [0, 128], sizes = [8, 128], strides = [1, 1]} : vector<8x256xf32> to vector<8x128xf32>
    %56 = arith.addf %54, %55 : vector<8x128xf32>
    %57 = math.tanh %56 : vector<8x128xf32>
    %cst_22 = arith.constant 5.000000e-01 : f32
    %58 = vector.broadcast %cst_22 : f32 to vector<8x128xf32>
    %59 = arith.mulf %58, %57 : vector<8x128xf32>
    %cst_23 = arith.constant 5.000000e-01 : f32
    %60 = vector.broadcast %cst_23 : f32 to vector<8x128xf32>
    %61 = arith.addf %59, %60 : vector<8x128xf32>
    %62 = arith.select %12, %57, %61 : vector<8x128xi1>, vector<8x128xf32>
    %63 = vector.extract_strided_slice %62 {offsets = [0, 0], sizes = [8, 32], strides = [1, 1]} : vector<8x128xf32> to vector<8x32xf32>
    %64 = vector.extract_strided_slice %62 {offsets = [0, 32], sizes = [8, 32], strides = [1, 1]} : vector<8x128xf32> to vector<8x32xf32>
    %65 = vector.extract_strided_slice %62 {offsets = [0, 64], sizes = [8, 32], strides = [1, 1]} : vector<8x128xf32> to vector<8x32xf32>
    %66 = vector.extract_strided_slice %62 {offsets = [0, 96], sizes = [8, 32], strides = [1, 1]} : vector<8x128xf32> to vector<8x32xf32>
    %67 = arith.mulf %64, %31 : vector<8x32xf32>
    %68 = arith.mulf %63, %65 : vector<8x32xf32>
    %69 = arith.addf %67, %68 : vector<8x32xf32>
    %70 = math.tanh %69 : vector<8x32xf32>
    %71 = arith.mulf %66, %70 : vector<8x32xf32>
    %72 = tpu.concatenate %71, %53 in 1 : vector<8x32xf32>, vector<8x32xf32> -> vector<8x64xf32>
    %cst_24 = arith.constant dense<0.000000e+00> : vector<8x256xf32>
    %73 = tpu.matmul %72, %13, %cst_24 {dimension_numbers = #tpu.dot_dimension_numbers<[1], [0], [0], [1], [0, 0, 1, 1], [], []>} : vector<8x64xf32>, vector<64x256xf32>, vector<8x256xf32> -> vector<8x256xf32>
    %74 = vector.extract_strided_slice %73 {offsets = [0, 0], sizes = [8, 128], strides = [1, 1]} : vector<8x256xf32> to vector<8x128xf32>
    %75 = vector.broadcast %14 : vector<1x128xf32> to vector<8x128xf32>
    %76 = arith.addf %74, %75 : vector<8x128xf32>
    %77 = math.tanh %76 : vector<8x128xf32>
    %cst_25 = arith.constant 5.000000e-01 : f32
    %78 = vector.broadcast %cst_25 : f32 to vector<8x128xf32>
    %79 = arith.mulf %78, %77 : vector<8x128xf32>
    %cst_26 = arith.constant 5.000000e-01 : f32
    %80 = vector.broadcast %cst_26 : f32 to vector<8x128xf32>
    %81 = arith.addf %79, %80 : vector<8x128xf32>
    %82 = arith.select %12, %77, %81 : vector<8x128xi1>, vector<8x128xf32>
    %83 = vector.extract_strided_slice %82 {offsets = [0, 0], sizes = [8, 32], strides = [1, 1]} : vector<8x128xf32> to vector<8x32xf32>
    %84 = vector.extract_strided_slice %82 {offsets = [0, 32], sizes = [8, 32], strides = [1, 1]} : vector<8x128xf32> to vector<8x32xf32>
    %85 = vector.extract_strided_slice %82 {offsets = [0, 64], sizes = [8, 32], strides = [1, 1]} : vector<8x128xf32> to vector<8x32xf32>
    %86 = vector.extract_strided_slice %82 {offsets = [0, 96], sizes = [8, 32], strides = [1, 1]} : vector<8x128xf32> to vector<8x32xf32>
    %87 = arith.mulf %84, %51 : vector<8x32xf32>
    %88 = arith.mulf %83, %85 : vector<8x32xf32>
    %89 = arith.addf %87, %88 : vector<8x32xf32>
    %90 = math.tanh %89 : vector<8x32xf32>
    %91 = arith.mulf %86, %90 : vector<8x32xf32>
    %c16 = arith.constant 16 : index
    %c0_27 = arith.constant 0 : index
    %92 = vector.load %arg8[%c16, %c0_27] : memref<64x128xf32, #tpu.memory_space<vmem>>, vector<8x128xf32>
    %93 = vector.extract_strided_slice %73 {offsets = [0, 128], sizes = [8, 128], strides = [1, 1]} : vector<8x256xf32> to vector<8x128xf32>
    %94 = arith.addf %92, %93 : vector<8x128xf32>
    %95 = math.tanh %94 : vector<8x128xf32>
    %cst_28 = arith.constant 5.000000e-01 : f32
    %96 = vector.broadcast %cst_28 : f32 to vector<8x128xf32>
    %97 = arith.mulf %96, %95 : vector<8x128xf32>
    %cst_29 = arith.constant 5.000000e-01 : f32
    %98 = vector.broadcast %cst_29 : f32 to vector<8x128xf32>
    %99 = arith.addf %97, %98 : vector<8x128xf32>
    %100 = arith.select %12, %95, %99 : vector<8x128xi1>, vector<8x128xf32>
    %101 = vector.extract_strided_slice %100 {offsets = [0, 0], sizes = [8, 32], strides = [1, 1]} : vector<8x128xf32> to vector<8x32xf32>
    %102 = vector.extract_strided_slice %100 {offsets = [0, 32], sizes = [8, 32], strides = [1, 1]} : vector<8x128xf32> to vector<8x32xf32>
    %103 = vector.extract_strided_slice %100 {offsets = [0, 64], sizes = [8, 32], strides = [1, 1]} : vector<8x128xf32> to vector<8x32xf32>
    %104 = vector.extract_strided_slice %100 {offsets = [0, 96], sizes = [8, 32], strides = [1, 1]} : vector<8x128xf32> to vector<8x32xf32>
    %105 = arith.mulf %102, %69 : vector<8x32xf32>
    %106 = arith.mulf %101, %103 : vector<8x32xf32>
    %107 = arith.addf %105, %106 : vector<8x32xf32>
    %108 = math.tanh %107 : vector<8x32xf32>
    %109 = arith.mulf %104, %108 : vector<8x32xf32>
    %110 = tpu.concatenate %109, %91 in 1 : vector<8x32xf32>, vector<8x32xf32> -> vector<8x64xf32>
    %cst_30 = arith.constant dense<0.000000e+00> : vector<8x256xf32>
    %111 = tpu.matmul %110, %13, %cst_30 {dimension_numbers = #tpu.dot_dimension_numbers<[1], [0], [0], [1], [0, 0, 1, 1], [], []>} : vector<8x64xf32>, vector<64x256xf32>, vector<8x256xf32> -> vector<8x256xf32>
    %112 = vector.extract_strided_slice %111 {offsets = [0, 0], sizes = [8, 128], strides = [1, 1]} : vector<8x256xf32> to vector<8x128xf32>
    %113 = vector.broadcast %14 : vector<1x128xf32> to vector<8x128xf32>
    %114 = arith.addf %112, %113 : vector<8x128xf32>
    %115 = math.tanh %114 : vector<8x128xf32>
    %cst_31 = arith.constant 5.000000e-01 : f32
    %116 = vector.broadcast %cst_31 : f32 to vector<8x128xf32>
    %117 = arith.mulf %116, %115 : vector<8x128xf32>
    %cst_32 = arith.constant 5.000000e-01 : f32
    %118 = vector.broadcast %cst_32 : f32 to vector<8x128xf32>
    %119 = arith.addf %117, %118 : vector<8x128xf32>
    %120 = arith.select %12, %115, %119 : vector<8x128xi1>, vector<8x128xf32>
    %121 = vector.extract_strided_slice %120 {offsets = [0, 0], sizes = [8, 32], strides = [1, 1]} : vector<8x128xf32> to vector<8x32xf32>
    %122 = vector.extract_strided_slice %120 {offsets = [0, 32], sizes = [8, 32], strides = [1, 1]} : vector<8x128xf32> to vector<8x32xf32>
    %123 = vector.extract_strided_slice %120 {offsets = [0, 64], sizes = [8, 32], strides = [1, 1]} : vector<8x128xf32> to vector<8x32xf32>
    %124 = vector.extract_strided_slice %120 {offsets = [0, 96], sizes = [8, 32], strides = [1, 1]} : vector<8x128xf32> to vector<8x32xf32>
    %125 = arith.mulf %122, %89 : vector<8x32xf32>
    %126 = arith.mulf %121, %123 : vector<8x32xf32>
    %127 = arith.addf %125, %126 : vector<8x32xf32>
    %128 = math.tanh %127 : vector<8x32xf32>
    %129 = arith.mulf %124, %128 : vector<8x32xf32>
    %c24 = arith.constant 24 : index
    %c0_33 = arith.constant 0 : index
    %130 = vector.load %arg8[%c24, %c0_33] : memref<64x128xf32, #tpu.memory_space<vmem>>, vector<8x128xf32>
    %131 = vector.extract_strided_slice %111 {offsets = [0, 128], sizes = [8, 128], strides = [1, 1]} : vector<8x256xf32> to vector<8x128xf32>
    %132 = arith.addf %130, %131 : vector<8x128xf32>
    %133 = math.tanh %132 : vector<8x128xf32>
    %cst_34 = arith.constant 5.000000e-01 : f32
    %134 = vector.broadcast %cst_34 : f32 to vector<8x128xf32>
    %135 = arith.mulf %134, %133 : vector<8x128xf32>
    %cst_35 = arith.constant 5.000000e-01 : f32
    %136 = vector.broadcast %cst_35 : f32 to vector<8x128xf32>
    %137 = arith.addf %135, %136 : vector<8x128xf32>
    %138 = arith.select %12, %133, %137 : vector<8x128xi1>, vector<8x128xf32>
    %139 = vector.extract_strided_slice %138 {offsets = [0, 0], sizes = [8, 32], strides = [1, 1]} : vector<8x128xf32> to vector<8x32xf32>
    %140 = vector.extract_strided_slice %138 {offsets = [0, 32], sizes = [8, 32], strides = [1, 1]} : vector<8x128xf32> to vector<8x32xf32>
    %141 = vector.extract_strided_slice %138 {offsets = [0, 64], sizes = [8, 32], strides = [1, 1]} : vector<8x128xf32> to vector<8x32xf32>
    %142 = vector.extract_strided_slice %138 {offsets = [0, 96], sizes = [8, 32], strides = [1, 1]} : vector<8x128xf32> to vector<8x32xf32>
    %143 = arith.mulf %140, %107 : vector<8x32xf32>
    %144 = arith.mulf %139, %141 : vector<8x32xf32>
    %145 = arith.addf %143, %144 : vector<8x32xf32>
    %146 = math.tanh %145 : vector<8x32xf32>
    %147 = arith.mulf %142, %146 : vector<8x32xf32>
    %148 = tpu.concatenate %147, %129 in 1 : vector<8x32xf32>, vector<8x32xf32> -> vector<8x64xf32>
    %cst_36 = arith.constant dense<0.000000e+00> : vector<8x256xf32>
    %149 = tpu.matmul %148, %13, %cst_36 {dimension_numbers = #tpu.dot_dimension_numbers<[1], [0], [0], [1], [0, 0, 1, 1], [], []>} : vector<8x64xf32>, vector<64x256xf32>, vector<8x256xf32> -> vector<8x256xf32>
    %150 = vector.extract_strided_slice %149 {offsets = [0, 0], sizes = [8, 128], strides = [1, 1]} : vector<8x256xf32> to vector<8x128xf32>
    %151 = vector.broadcast %14 : vector<1x128xf32> to vector<8x128xf32>
    %152 = arith.addf %150, %151 : vector<8x128xf32>
    %153 = math.tanh %152 : vector<8x128xf32>
    %cst_37 = arith.constant 5.000000e-01 : f32
    %154 = vector.broadcast %cst_37 : f32 to vector<8x128xf32>
    %155 = arith.mulf %154, %153 : vector<8x128xf32>
    %cst_38 = arith.constant 5.000000e-01 : f32
    %156 = vector.broadcast %cst_38 : f32 to vector<8x128xf32>
    %157 = arith.addf %155, %156 : vector<8x128xf32>
    %158 = arith.select %12, %153, %157 : vector<8x128xi1>, vector<8x128xf32>
    %159 = vector.extract_strided_slice %158 {offsets = [0, 0], sizes = [8, 32], strides = [1, 1]} : vector<8x128xf32> to vector<8x32xf32>
    %160 = vector.extract_strided_slice %158 {offsets = [0, 32], sizes = [8, 32], strides = [1, 1]} : vector<8x128xf32> to vector<8x32xf32>
    %161 = vector.extract_strided_slice %158 {offsets = [0, 64], sizes = [8, 32], strides = [1, 1]} : vector<8x128xf32> to vector<8x32xf32>
    %162 = vector.extract_strided_slice %158 {offsets = [0, 96], sizes = [8, 32], strides = [1, 1]} : vector<8x128xf32> to vector<8x32xf32>
    %163 = arith.mulf %160, %127 : vector<8x32xf32>
    %164 = arith.mulf %159, %161 : vector<8x32xf32>
    %165 = arith.addf %163, %164 : vector<8x32xf32>
    %166 = math.tanh %165 : vector<8x32xf32>
    %167 = arith.mulf %162, %166 : vector<8x32xf32>
    %c32 = arith.constant 32 : index
    %c0_39 = arith.constant 0 : index
    %168 = vector.load %arg8[%c32, %c0_39] : memref<64x128xf32, #tpu.memory_space<vmem>>, vector<8x128xf32>
    %169 = vector.extract_strided_slice %149 {offsets = [0, 128], sizes = [8, 128], strides = [1, 1]} : vector<8x256xf32> to vector<8x128xf32>
    %170 = arith.addf %168, %169 : vector<8x128xf32>
    %171 = math.tanh %170 : vector<8x128xf32>
    %cst_40 = arith.constant 5.000000e-01 : f32
    %172 = vector.broadcast %cst_40 : f32 to vector<8x128xf32>
    %173 = arith.mulf %172, %171 : vector<8x128xf32>
    %cst_41 = arith.constant 5.000000e-01 : f32
    %174 = vector.broadcast %cst_41 : f32 to vector<8x128xf32>
    %175 = arith.addf %173, %174 : vector<8x128xf32>
    %176 = arith.select %12, %171, %175 : vector<8x128xi1>, vector<8x128xf32>
    %177 = vector.extract_strided_slice %176 {offsets = [0, 0], sizes = [8, 32], strides = [1, 1]} : vector<8x128xf32> to vector<8x32xf32>
    %178 = vector.extract_strided_slice %176 {offsets = [0, 32], sizes = [8, 32], strides = [1, 1]} : vector<8x128xf32> to vector<8x32xf32>
    %179 = vector.extract_strided_slice %176 {offsets = [0, 64], sizes = [8, 32], strides = [1, 1]} : vector<8x128xf32> to vector<8x32xf32>
    %180 = vector.extract_strided_slice %176 {offsets = [0, 96], sizes = [8, 32], strides = [1, 1]} : vector<8x128xf32> to vector<8x32xf32>
    %181 = arith.mulf %178, %145 : vector<8x32xf32>
    %182 = arith.mulf %177, %179 : vector<8x32xf32>
    %183 = arith.addf %181, %182 : vector<8x32xf32>
    %184 = math.tanh %183 : vector<8x32xf32>
    %185 = arith.mulf %180, %184 : vector<8x32xf32>
    %186 = tpu.concatenate %185, %167 in 1 : vector<8x32xf32>, vector<8x32xf32> -> vector<8x64xf32>
    %cst_42 = arith.constant dense<0.000000e+00> : vector<8x256xf32>
    %187 = tpu.matmul %186, %13, %cst_42 {dimension_numbers = #tpu.dot_dimension_numbers<[1], [0], [0], [1], [0, 0, 1, 1], [], []>} : vector<8x64xf32>, vector<64x256xf32>, vector<8x256xf32> -> vector<8x256xf32>
    %188 = vector.extract_strided_slice %187 {offsets = [0, 0], sizes = [8, 128], strides = [1, 1]} : vector<8x256xf32> to vector<8x128xf32>
    %189 = vector.broadcast %14 : vector<1x128xf32> to vector<8x128xf32>
    %190 = arith.addf %188, %189 : vector<8x128xf32>
    %191 = math.tanh %190 : vector<8x128xf32>
    %cst_43 = arith.constant 5.000000e-01 : f32
    %192 = vector.broadcast %cst_43 : f32 to vector<8x128xf32>
    %193 = arith.mulf %192, %191 : vector<8x128xf32>
    %cst_44 = arith.constant 5.000000e-01 : f32
    %194 = vector.broadcast %cst_44 : f32 to vector<8x128xf32>
    %195 = arith.addf %193, %194 : vector<8x128xf32>
    %196 = arith.select %12, %191, %195 : vector<8x128xi1>, vector<8x128xf32>
    %197 = vector.extract_strided_slice %196 {offsets = [0, 0], sizes = [8, 32], strides = [1, 1]} : vector<8x128xf32> to vector<8x32xf32>
    %198 = vector.extract_strided_slice %196 {offsets = [0, 32], sizes = [8, 32], strides = [1, 1]} : vector<8x128xf32> to vector<8x32xf32>
    %199 = vector.extract_strided_slice %196 {offsets = [0, 64], sizes = [8, 32], strides = [1, 1]} : vector<8x128xf32> to vector<8x32xf32>
    %200 = vector.extract_strided_slice %196 {offsets = [0, 96], sizes = [8, 32], strides = [1, 1]} : vector<8x128xf32> to vector<8x32xf32>
    %201 = arith.mulf %198, %165 : vector<8x32xf32>
    %202 = arith.mulf %197, %199 : vector<8x32xf32>
    %203 = arith.addf %201, %202 : vector<8x32xf32>
    %204 = math.tanh %203 : vector<8x32xf32>
    %205 = arith.mulf %200, %204 : vector<8x32xf32>
    %c40 = arith.constant 40 : index
    %c0_45 = arith.constant 0 : index
    %206 = vector.load %arg8[%c40, %c0_45] : memref<64x128xf32, #tpu.memory_space<vmem>>, vector<8x128xf32>
    %207 = vector.extract_strided_slice %187 {offsets = [0, 128], sizes = [8, 128], strides = [1, 1]} : vector<8x256xf32> to vector<8x128xf32>
    %208 = arith.addf %206, %207 : vector<8x128xf32>
    %209 = math.tanh %208 : vector<8x128xf32>
    %cst_46 = arith.constant 5.000000e-01 : f32
    %210 = vector.broadcast %cst_46 : f32 to vector<8x128xf32>
    %211 = arith.mulf %210, %209 : vector<8x128xf32>
    %cst_47 = arith.constant 5.000000e-01 : f32
    %212 = vector.broadcast %cst_47 : f32 to vector<8x128xf32>
    %213 = arith.addf %211, %212 : vector<8x128xf32>
    %214 = arith.select %12, %209, %213 : vector<8x128xi1>, vector<8x128xf32>
    %215 = vector.extract_strided_slice %214 {offsets = [0, 0], sizes = [8, 32], strides = [1, 1]} : vector<8x128xf32> to vector<8x32xf32>
    %216 = vector.extract_strided_slice %214 {offsets = [0, 32], sizes = [8, 32], strides = [1, 1]} : vector<8x128xf32> to vector<8x32xf32>
    %217 = vector.extract_strided_slice %214 {offsets = [0, 64], sizes = [8, 32], strides = [1, 1]} : vector<8x128xf32> to vector<8x32xf32>
    %218 = vector.extract_strided_slice %214 {offsets = [0, 96], sizes = [8, 32], strides = [1, 1]} : vector<8x128xf32> to vector<8x32xf32>
    %219 = arith.mulf %216, %183 : vector<8x32xf32>
    %220 = arith.mulf %215, %217 : vector<8x32xf32>
    %221 = arith.addf %219, %220 : vector<8x32xf32>
    %222 = math.tanh %221 : vector<8x32xf32>
    %223 = arith.mulf %218, %222 : vector<8x32xf32>
    %224 = tpu.concatenate %223, %205 in 1 : vector<8x32xf32>, vector<8x32xf32> -> vector<8x64xf32>
    %cst_48 = arith.constant dense<0.000000e+00> : vector<8x256xf32>
    %225 = tpu.matmul %224, %13, %cst_48 {dimension_numbers = #tpu.dot_dimension_numbers<[1], [0], [0], [1], [0, 0, 1, 1], [], []>} : vector<8x64xf32>, vector<64x256xf32>, vector<8x256xf32> -> vector<8x256xf32>
    %226 = vector.extract_strided_slice %225 {offsets = [0, 0], sizes = [8, 128], strides = [1, 1]} : vector<8x256xf32> to vector<8x128xf32>
    %227 = vector.broadcast %14 : vector<1x128xf32> to vector<8x128xf32>
    %228 = arith.addf %226, %227 : vector<8x128xf32>
    %229 = math.tanh %228 : vector<8x128xf32>
    %cst_49 = arith.constant 5.000000e-01 : f32
    %230 = vector.broadcast %cst_49 : f32 to vector<8x128xf32>
    %231 = arith.mulf %230, %229 : vector<8x128xf32>
    %cst_50 = arith.constant 5.000000e-01 : f32
    %232 = vector.broadcast %cst_50 : f32 to vector<8x128xf32>
    %233 = arith.addf %231, %232 : vector<8x128xf32>
    %234 = arith.select %12, %229, %233 : vector<8x128xi1>, vector<8x128xf32>
    %235 = vector.extract_strided_slice %234 {offsets = [0, 0], sizes = [8, 32], strides = [1, 1]} : vector<8x128xf32> to vector<8x32xf32>
    %236 = vector.extract_strided_slice %234 {offsets = [0, 32], sizes = [8, 32], strides = [1, 1]} : vector<8x128xf32> to vector<8x32xf32>
    %237 = vector.extract_strided_slice %234 {offsets = [0, 64], sizes = [8, 32], strides = [1, 1]} : vector<8x128xf32> to vector<8x32xf32>
    %238 = vector.extract_strided_slice %234 {offsets = [0, 96], sizes = [8, 32], strides = [1, 1]} : vector<8x128xf32> to vector<8x32xf32>
    %239 = arith.mulf %236, %203 : vector<8x32xf32>
    %240 = arith.mulf %235, %237 : vector<8x32xf32>
    %241 = arith.addf %239, %240 : vector<8x32xf32>
    %242 = math.tanh %241 : vector<8x32xf32>
    %243 = arith.mulf %238, %242 : vector<8x32xf32>
    %c48 = arith.constant 48 : index
    %c0_51 = arith.constant 0 : index
    %244 = vector.load %arg8[%c48, %c0_51] : memref<64x128xf32, #tpu.memory_space<vmem>>, vector<8x128xf32>
    %245 = vector.extract_strided_slice %225 {offsets = [0, 128], sizes = [8, 128], strides = [1, 1]} : vector<8x256xf32> to vector<8x128xf32>
    %246 = arith.addf %244, %245 : vector<8x128xf32>
    %247 = math.tanh %246 : vector<8x128xf32>
    %cst_52 = arith.constant 5.000000e-01 : f32
    %248 = vector.broadcast %cst_52 : f32 to vector<8x128xf32>
    %249 = arith.mulf %248, %247 : vector<8x128xf32>
    %cst_53 = arith.constant 5.000000e-01 : f32
    %250 = vector.broadcast %cst_53 : f32 to vector<8x128xf32>
    %251 = arith.addf %249, %250 : vector<8x128xf32>
    %252 = arith.select %12, %247, %251 : vector<8x128xi1>, vector<8x128xf32>
    %253 = vector.extract_strided_slice %252 {offsets = [0, 0], sizes = [8, 32], strides = [1, 1]} : vector<8x128xf32> to vector<8x32xf32>
    %254 = vector.extract_strided_slice %252 {offsets = [0, 32], sizes = [8, 32], strides = [1, 1]} : vector<8x128xf32> to vector<8x32xf32>
    %255 = vector.extract_strided_slice %252 {offsets = [0, 64], sizes = [8, 32], strides = [1, 1]} : vector<8x128xf32> to vector<8x32xf32>
    %256 = vector.extract_strided_slice %252 {offsets = [0, 96], sizes = [8, 32], strides = [1, 1]} : vector<8x128xf32> to vector<8x32xf32>
    %257 = arith.mulf %254, %221 : vector<8x32xf32>
    %258 = arith.mulf %253, %255 : vector<8x32xf32>
    %259 = arith.addf %257, %258 : vector<8x32xf32>
    %260 = math.tanh %259 : vector<8x32xf32>
    %261 = arith.mulf %256, %260 : vector<8x32xf32>
    %262 = tpu.concatenate %261, %243 in 1 : vector<8x32xf32>, vector<8x32xf32> -> vector<8x64xf32>
    %cst_54 = arith.constant dense<0.000000e+00> : vector<8x256xf32>
    %263 = tpu.matmul %262, %13, %cst_54 {dimension_numbers = #tpu.dot_dimension_numbers<[1], [0], [0], [1], [0, 0, 1, 1], [], []>} : vector<8x64xf32>, vector<64x256xf32>, vector<8x256xf32> -> vector<8x256xf32>
    %264 = vector.extract_strided_slice %263 {offsets = [0, 0], sizes = [8, 128], strides = [1, 1]} : vector<8x256xf32> to vector<8x128xf32>
    %265 = vector.broadcast %14 : vector<1x128xf32> to vector<8x128xf32>
    %266 = arith.addf %264, %265 : vector<8x128xf32>
    %267 = math.tanh %266 : vector<8x128xf32>
    %cst_55 = arith.constant 5.000000e-01 : f32
    %268 = vector.broadcast %cst_55 : f32 to vector<8x128xf32>
    %269 = arith.mulf %268, %267 : vector<8x128xf32>
    %cst_56 = arith.constant 5.000000e-01 : f32
    %270 = vector.broadcast %cst_56 : f32 to vector<8x128xf32>
    %271 = arith.addf %269, %270 : vector<8x128xf32>
    %272 = arith.select %12, %267, %271 : vector<8x128xi1>, vector<8x128xf32>
    %273 = vector.extract_strided_slice %272 {offsets = [0, 0], sizes = [8, 32], strides = [1, 1]} : vector<8x128xf32> to vector<8x32xf32>
    %274 = vector.extract_strided_slice %272 {offsets = [0, 32], sizes = [8, 32], strides = [1, 1]} : vector<8x128xf32> to vector<8x32xf32>
    %275 = vector.extract_strided_slice %272 {offsets = [0, 64], sizes = [8, 32], strides = [1, 1]} : vector<8x128xf32> to vector<8x32xf32>
    %276 = vector.extract_strided_slice %272 {offsets = [0, 96], sizes = [8, 32], strides = [1, 1]} : vector<8x128xf32> to vector<8x32xf32>
    %277 = arith.mulf %274, %241 : vector<8x32xf32>
    %278 = arith.mulf %273, %275 : vector<8x32xf32>
    %279 = arith.addf %277, %278 : vector<8x32xf32>
    %280 = math.tanh %279 : vector<8x32xf32>
    %281 = arith.mulf %276, %280 : vector<8x32xf32>
    %c56 = arith.constant 56 : index
    %c0_57 = arith.constant 0 : index
    %282 = vector.load %arg8[%c56, %c0_57] : memref<64x128xf32, #tpu.memory_space<vmem>>, vector<8x128xf32>
    %283 = vector.extract_strided_slice %263 {offsets = [0, 128], sizes = [8, 128], strides = [1, 1]} : vector<8x256xf32> to vector<8x128xf32>
    %284 = arith.addf %282, %283 : vector<8x128xf32>
    %285 = math.tanh %284 : vector<8x128xf32>
    %cst_58 = arith.constant 5.000000e-01 : f32
    %286 = vector.broadcast %cst_58 : f32 to vector<8x128xf32>
    %287 = arith.mulf %286, %285 : vector<8x128xf32>
    %cst_59 = arith.constant 5.000000e-01 : f32
    %288 = vector.broadcast %cst_59 : f32 to vector<8x128xf32>
    %289 = arith.addf %287, %288 : vector<8x128xf32>
    %290 = arith.select %12, %285, %289 : vector<8x128xi1>, vector<8x128xf32>
    %291 = vector.extract_strided_slice %290 {offsets = [0, 0], sizes = [8, 32], strides = [1, 1]} : vector<8x128xf32> to vector<8x32xf32>
    %292 = vector.extract_strided_slice %290 {offsets = [0, 32], sizes = [8, 32], strides = [1, 1]} : vector<8x128xf32> to vector<8x32xf32>
    %293 = vector.extract_strided_slice %290 {offsets = [0, 64], sizes = [8, 32], strides = [1, 1]} : vector<8x128xf32> to vector<8x32xf32>
    %294 = vector.extract_strided_slice %290 {offsets = [0, 96], sizes = [8, 32], strides = [1, 1]} : vector<8x128xf32> to vector<8x32xf32>
    %295 = arith.mulf %292, %259 : vector<8x32xf32>
    %296 = arith.mulf %291, %293 : vector<8x32xf32>
    %297 = arith.addf %295, %296 : vector<8x32xf32>
    %298 = math.tanh %297 : vector<8x32xf32>
    %299 = arith.mulf %294, %298 : vector<8x32xf32>
    %300 = tpu.concatenate %299, %281 in 1 : vector<8x32xf32>, vector<8x32xf32> -> vector<8x64xf32>
    %cst_60 = arith.constant dense<0.000000e+00> : vector<8x256xf32>
    %301 = tpu.matmul %300, %13, %cst_60 {dimension_numbers = #tpu.dot_dimension_numbers<[1], [0], [0], [1], [0, 0, 1, 1], [], []>} : vector<8x64xf32>, vector<64x256xf32>, vector<8x256xf32> -> vector<8x256xf32>
    %302 = vector.extract_strided_slice %301 {offsets = [0, 0], sizes = [8, 128], strides = [1, 1]} : vector<8x256xf32> to vector<8x128xf32>
    %303 = vector.broadcast %14 : vector<1x128xf32> to vector<8x128xf32>
    %304 = arith.addf %302, %303 : vector<8x128xf32>
    %305 = math.tanh %304 : vector<8x128xf32>
    %cst_61 = arith.constant 5.000000e-01 : f32
    %306 = vector.broadcast %cst_61 : f32 to vector<8x128xf32>
    %307 = arith.mulf %306, %305 : vector<8x128xf32>
    %cst_62 = arith.constant 5.000000e-01 : f32
    %308 = vector.broadcast %cst_62 : f32 to vector<8x128xf32>
    %309 = arith.addf %307, %308 : vector<8x128xf32>
    %310 = arith.select %12, %305, %309 : vector<8x128xi1>, vector<8x128xf32>
    %311 = vector.extract_strided_slice %310 {offsets = [0, 0], sizes = [8, 32], strides = [1, 1]} : vector<8x128xf32> to vector<8x32xf32>
    %312 = vector.extract_strided_slice %310 {offsets = [0, 32], sizes = [8, 32], strides = [1, 1]} : vector<8x128xf32> to vector<8x32xf32>
    %313 = vector.extract_strided_slice %310 {offsets = [0, 64], sizes = [8, 32], strides = [1, 1]} : vector<8x128xf32> to vector<8x32xf32>
    %314 = vector.extract_strided_slice %310 {offsets = [0, 96], sizes = [8, 32], strides = [1, 1]} : vector<8x128xf32> to vector<8x32xf32>
    %315 = arith.mulf %312, %279 : vector<8x32xf32>
    %316 = arith.mulf %311, %313 : vector<8x32xf32>
    %317 = arith.addf %315, %316 : vector<8x32xf32>
    %318 = math.tanh %317 : vector<8x32xf32>
    %319 = arith.mulf %314, %318 : vector<8x32xf32>
    %c0_63 = arith.constant 0 : index
    %c0_64 = arith.constant 0 : index
    %320 = vector.load %arg5[%c0_63, %c0_64] : memref<32x128xf32, #tpu.memory_space<vmem>>, vector<32x128xf32>
    %cst_65 = arith.constant dense<0.000000e+00> : vector<8x128xf32>
    %321 = tpu.matmul %319, %320, %cst_65 {dimension_numbers = #tpu.dot_dimension_numbers<[1], [0], [0], [1], [0, 0, 1, 1], [], []>} : vector<8x32xf32>, vector<32x128xf32>, vector<8x128xf32> -> vector<8x128xf32>
    %c0_66 = arith.constant 0 : index
    %c0_67 = arith.constant 0 : index
    %322 = vector.load %arg6[%c0_66, %c0_67] : memref<1x128xf32, #tpu.memory_space<vmem>>, vector<1x128xf32>
    %323 = vector.broadcast %322 : vector<1x128xf32> to vector<8x128xf32>
    %324 = arith.addf %321, %323 : vector<8x128xf32>
    %c0_68 = arith.constant 0 : index
    %c0_69 = arith.constant 0 : index
    %325 = vector.load %arg7[%c0_68, %c0_69] : memref<8x128xf32, #tpu.memory_space<vmem>>, vector<8x128xf32>
    tpu.vector_store %arg7[%c0_68, %c0_69], %324 {strides = array<i32>} : memref<8x128xf32, #tpu.memory_space<vmem>>, vector<8x128xf32>,
    return
  }
}

</mosaic_0001>

<bundles_post_ra>
// kernel: tpu_custom_call.1
= control target key start
LH: loop header
LB: loop body
LE: loop exit
PB: predicated region body
PF: predicated region fallthrough
CT: control target
= control target key end

     0   :  { %12 = vsyncpa [#allocation4], 0  ;;  %s1537_s0 = inlined_call_operand.vmem [shape: f32[64,4], index: 0, kind: input, shape index: {}]   ;;  %s1538_s1 = inlined_call_operand.vmem [shape: f32[4,128], index: 1, kind: input, shape index: {}]   ;;  %s1539_s2 = inlined_call_operand.vmem [shape: f32[1,128], index: 2, kind: input, shape index: {}]   ;;  %s1540_s3 = inlined_call_operand.hbm [shape: f32[64,256], index: 3, kind: input, shape index: {}]   ;;  %s1541_s4 = inlined_call_operand.vmem [shape: f32[1,128], index: 4, kind: input, shape index: {}]   ;;  %s1542_s5 = inlined_call_operand.vmem [shape: f32[32,128], index: 5, kind: input, shape index: {}]   ;;  %s1543_s6 = inlined_call_operand.vmem [shape: f32[1,128], index: 6, kind: input, shape index: {}]   ;;  %s1544_s7 = inlined_call_operand.hbm [shape: f32[8,128], index: 7, kind: output, shape index: {}]  }
   0x1   :  { %13 = vsyncpa [#allocation5], 0  ;;  %s24_s26 = sshll.u32 %s1540_s3, 4  ;;  %s1113_s27 = smov [#allocation3]   ;;  %s25_s26 = int_to_ptr.hbm [resolvable:$true] %s24_s26 }
   0x2   :  { %s26_s28 = sshll.u32 %s1113_s27, 4  ;;  %s1114_s29 = smov 256   ;;  %s27_s28 = int_to_ptr.vmem [resolvable:$true] %s26_s28 }
   0x3   :  { %s1115_s30 = smov 16  }
   0x4   :  { %32 = dma.hbm_to_vmem [thread:$0]  %s25_s26, 2048, %s27_s28, [#allocation4], %s1114_s29, %s1114_s29, %s1115_s30  }
   0x5   :  { %1109 = dma.done.wait [#allocation4], 2048  }
   0x6   :  { %1110 = vsyncadd [#allocation4], 4294965248  ;;  %vm81_vm0 = vcmask 1043456   ;;  %vm56_vm1 = vcmask 31744   ;;  %v51_v0 = vld [vmem:[%s1538_s1] sm:$0xf]  ;;  %v134_v4 = vlaneseq }
   0x7   :  { %v43_v1 = vld [vmem:[%s1537_s0] sm:$0xff]  ;;  %963 = vmatpush.msk.msra.mxu0 %vm81_vm0, %v51_v0  ;;  %s1116_s1 = smov 64   ;;  %v1187_v18 = vld [vmem:[#allocation3 + $0x70] sm:$0xff]  ;;  %v1189_v19 = vld [vmem:[#allocation3 + $0x78] sm:$0xff]  ;;  %vm182_vm5 = vcmask 261120   ;;  %vm184_vm6 = vcmask 523264  }
   0x8   :  { %964 = vmatmul.msk.f32.vlgmr.msra.gmra.mxu0 %vm56_vm1, %v43_v1  ;;  %v1172_v2 = vld [vmem:[%s1539_s2] ss:$0 sm:$0xff]  ;;  %v135_v6 = vand.u32 127, %v134_v4  ;;  %s1117_s2 = smov 32   ;;  %196 = vmatpush.msra.mxu1 %v1187_v18  ;;  %v1195_v21 = vld [vmem:[#allocation3 + $0x68] sm:$0xff]  ;;  %v1197_v22 = vld [vmem:[#allocation3 + $0x50] sm:$0xff] }
   0x9   :  { %v1191_v20 = vld [vmem:[#allocation3 + $0x60] sm:$0xff]  ;;  %216 = vmatpush.msra.mxu2 %v1189_v19  ;;  %v1199_v23 = vld [vmem:[#allocation3 + $0x58] sm:$0xff]  ;;  %296 = vmatpush.msra.mxu3 %v1187_v18  ;;  %v1207_v25 = vld [vmem:[#allocation3 + $0x48] sm:$0xff]  ;;  %s953_s16 = sshll.u32 %s1544_s7, 4  ;;  %s954_s16 = int_to_ptr.hbm [resolvable:$true] %s953_s16 }
   0xa   :  { %vm136_vm2 = vcmp.ge.s32.totalorder %v135_v6, 64  ;;  %vm137_vm3 = vcmp.lt.s32.totalorder %v135_v6, 96  ;;  %781 = vmatpush.msrb.mxu0 %v1187_v18  ;;  %197 = vmatpush.msra.mxu1 %v1191_v20  ;;  %v1205_v24 = vld [vmem:[#allocation3 + $0x40] sm:$0xff]  ;;  %v1213_v26 = vld [vmem:[#allocation3 + $0x30] sm:$0xff]  ;;  %v1215_v27 = vld [vmem:[#allocation3 + $0x38] sm:$0xff] }
   0xb   :  { %vm1175_vm4 = vmand %vm136_vm2, %vm137_vm3  ;;  %217 = vmatpush.msra.mxu2 %v1195_v21  ;;  %297 = vmatpush.msra.mxu3 %v1191_v20  ;;  %v1221_v28 = vld [vmem:[#allocation3 + $0x20] sm:$0xff]  ;;  %v1223_v29 = vld [vmem:[#allocation3 + $0x28] sm:$0xff] }
   0xc   :  { %782 = vmatpush.msrb.mxu0 %v1191_v20  ;;  %198 = vmatpush.msra.mxu1 %v1197_v22  ;;  %v1229_v30 = vld [vmem:[#allocation3 + $0x10] sm:$0xff]  ;;  %v1231_v31 = vld [vmem:[#allocation3 + $0x18] sm:$0xff]  ;;  %v1244_v34 = vld [vmem:[#allocation3] sm:$0xff] }
   0xd   :  { %218 = vmatpush.msra.mxu2 %v1199_v23  ;;  %298 = vmatpush.msra.mxu3 %v1197_v22  ;;  %v1246_v35 = vld [vmem:[#allocation3 + $0x8] sm:$0xff]  ;;  %v1302_v39 = vld [vmem:[%s1541_s4] ss:$0 sm:$0xff]  ;;  %v914_v9 = vld [vmem:[%s1542_s5 + $0x10] sm:$0xff] }
   0xe   :  { %783 = vmatpush.msrb.mxu0 %v1197_v22  ;;  %199 = vmatpush.msra.mxu1 %v1205_v24  ;;  %v44_v36 = vld [vmem:[%s1537_s0 + $0x8] sm:$0xff] }
   0xf   :  { %219 = vmatpush.msra.mxu2 %v1207_v25  ;;  %299 = vmatpush.msra.mxu3 %v1205_v24 }
  0x10   :  { %784 = vmatpush.msrb.mxu0 %v1205_v24  ;;  %200 = vmatpush.msra.mxu1 %v1213_v26 }
  0x11   :  { %220 = vmatpush.msra.mxu2 %v1215_v27  ;;  %300 = vmatpush.msra.mxu3 %v1213_v26 }
  0x12   :  { %785 = vmatpush.msrb.mxu0 %v1213_v26  ;;  %201 = vmatpush.msra.mxu1 %v1221_v28 }
  0x13   :  { %221 = vmatpush.msra.mxu2 %v1223_v29  ;;  %301 = vmatpush.msra.mxu3 %v1221_v28 }
  0x14   :  { %786 = vmatpush.msrb.mxu0 %v1221_v28  ;;  %202 = vmatpush.msra.mxu1 %v1229_v30 }
  0x15   :  { %222 = vmatpush.msra.mxu2 %v1231_v31  ;;  %302 = vmatpush.msra.mxu3 %v1229_v30 }
  0x16   :  { %787 = vmatpush.msrb.mxu0 %v1229_v30  ;;  %203 = vmatpush.msra.mxu1 %v1244_v34 }
  0x17   :  { %223 = vmatpush.msra.mxu2 %v1246_v35  ;;  %303 = vmatpush.msra.mxu3 %v1244_v34 }
  0x18   :  { %316 = vmatpush.msrb.mxu1 %v1189_v19  ;;  %965 = vmatmul.msk.f32.gmra.mxu0 %vm56_vm1, %v44_v36 }
  0x19   :  { %393 = vmatpush.msrb.mxu2 %v1187_v18  ;;  %413 = vmatpush.msrb.mxu3 %v1189_v19 }
  0x1a   :  { %317 = vmatpush.msrb.mxu1 %v1195_v21  ;;  %788 = vmatpush.msrb.mxu0 %v1244_v34 }
  0x1b   :  { %394 = vmatpush.msrb.mxu2 %v1191_v20  ;;  %414 = vmatpush.msrb.mxu3 %v1195_v21 }
  0x1c   :  { %318 = vmatpush.msrb.mxu1 %v1199_v23 }
  0x1d   :  { %395 = vmatpush.msrb.mxu2 %v1197_v22  ;;  %415 = vmatpush.msrb.mxu3 %v1199_v23 }
  0x1e   :  { %319 = vmatpush.msrb.mxu1 %v1207_v25 }
  0x1f   :  { %396 = vmatpush.msrb.mxu2 %v1205_v24  ;;  %416 = vmatpush.msrb.mxu3 %v1207_v25 }
  0x20   :  { %320 = vmatpush.msrb.mxu1 %v1215_v27 }
  0x21   :  { %397 = vmatpush.msrb.mxu2 %v1213_v26  ;;  %417 = vmatpush.msrb.mxu3 %v1215_v27 }
  0x22   :  { %321 = vmatpush.msrb.mxu1 %v1223_v29 }
  0x23   :  { %398 = vmatpush.msrb.mxu2 %v1221_v28  ;;  %418 = vmatpush.msrb.mxu3 %v1223_v29 }
  0x24   :  { %322 = vmatpush.msrb.mxu1 %v1231_v31 }
  0x25   :  { %399 = vmatpush.msrb.mxu2 %v1229_v30  ;;  %419 = vmatpush.msrb.mxu3 %v1231_v31 }
  0x26   :  { %323 = vmatpush.msrb.mxu1 %v1246_v35 }
  0x27   :  { %400 = vmatpush.msrb.mxu2 %v1244_v34  ;;  %420 = vmatpush.msrb.mxu3 %v1246_v35 }
  0x85   :  { %v102_v3 = vpop.f32.mrf.mxu0 }
  0x86   :  { %v103_v5 = vadd.f32 %v1172_v2, %v102_v3 }
  0x88   :  { %997 = vtanh.f32 %v103_v5 }
  0x8e   :  { %v998_v7 = vpop.eup %997 }
  0x8f   :  { %v158_v8 = vmul.f32 0.5, %v998_v7 }
  0x91   :  { %v159_v10 = vadd.f32 0.5, %v158_v8 }
  0x93   :  { %v160_v11 = vsel %vm1175_vm4, %v998_v7, %v159_v10  ;;  %v45_v7 = vld [vmem:[%s1537_s0 + $0x10] sm:$0xff] }
  0x94   :  { %163 = vrot.lane.b32.xlu0 %v160_v11, %s1116_s1  ;;  %v161_v14 = vmul.f32 0.0, %v160_v11  ;;  %966 = vmatmul.msk.f32.gmra.mxu0 %vm56_vm1, %v45_v7 }
  0x95   :  { %v105_v41 = vpop.f32.mrf.mxu0 }
  0x96   :  { %v106_v43 = vadd.f32 %v1172_v2, %v105_v41 }
 0x106   :  { %v164_v12 = vpop.permute.xlu0 %163 }
 0x107   :  { %v166_v13 = vmul.f32 %v164_v12, %v160_v11 }
 0x109   :  { %168 = vrot.lane.b32.xlu0 %v166_v13, %s1117_s2 }
 0x111   :  { %v108_v12 = vpop.f32.mrf.mxu0 }
 0x112   :  { %v109_v13 = vadd.f32 %v1172_v2, %v108_v12 }
 0x17b   :  { %v169_v15 = vpop.permute.xlu0 %168 }
 0x17c   :  { %v1183_v16 = vadd.f32 %v169_v15, %v161_v14 }
 0x17e   :  { %999 = vtanh.f32 %v1183_v16 }
 0x184   :  { %v1000_v17 = vpop.eup %999 }
 0x185   :  { %174 = vrot.lane.b32.xlu1 %v1000_v17, %s1116_s1 }
 0x1f7   :  { %v175_v32 = vpop.permute.xlu1 %174 }
 0x1f8   :  { %v177_v33 = vmul.f32 %v175_v32, %v160_v11 }
 0x1fa   :  { %179 = vrot.lane.b32.xlu1 %v177_v33, %s1117_s2 }
 0x26c   :  { %v180_v37 = vpop.permute.xlu1 %179 }
 0x26d   :  { %v183_v38 = vsel %vm182_vm5, %v180_v37, 0.0 }
 0x26e   :  { %972 = vmatmul.msk.f32.vlgmr.msra.gmra.mxu1 %vm184_vm6, %v183_v38  ;;  %973 = vmatmul.msk.f32.vlgmr.msra.gmra.mxu2 %vm184_vm6, %v183_v38 }
 0x26f   :  { %490 = vmatpush.msra.mxu1 %v1187_v18  ;;  %510 = vmatpush.msra.mxu2 %v1189_v19 }
 0x271   :  { %491 = vmatpush.msra.mxu1 %v1191_v20  ;;  %511 = vmatpush.msra.mxu2 %v1195_v21 }
 0x273   :  { %492 = vmatpush.msra.mxu1 %v1197_v22  ;;  %512 = vmatpush.msra.mxu2 %v1199_v23 }
 0x275   :  { %493 = vmatpush.msra.mxu1 %v1205_v24  ;;  %513 = vmatpush.msra.mxu2 %v1207_v25 }
 0x277   :  { %494 = vmatpush.msra.mxu1 %v1213_v26  ;;  %514 = vmatpush.msra.mxu2 %v1215_v27 }
 0x279   :  { %495 = vmatpush.msra.mxu1 %v1221_v28  ;;  %515 = vmatpush.msra.mxu2 %v1223_v29 }
 0x27b   :  { %496 = vmatpush.msra.mxu1 %v1229_v30  ;;  %516 = vmatpush.msra.mxu2 %v1231_v31 }
 0x27d   :  { %497 = vmatpush.msra.mxu1 %v1244_v34  ;;  %517 = vmatpush.msra.mxu2 %v1246_v35 }
 0x2eb   :  { %v205_v40 = vpop.f32.mrf.mxu1 }
 0x2ec   :  { %v231_v42 = vadd.f32 %v1302_v39, %v205_v40 }
 0x2ee   :  { %1001 = vtanh.f32 %v231_v42 }
 0x2f1   :  { %v225_v44 = vpop.f32.mrf.mxu2 }
 0x2f2   :  { %v254_v45 = vadd.f32 %v225_v44, %v106_v43 }
 0x2f4   :  { %v1002_v46 = vpop.eup %1001  ;;  %1003 = vtanh.f32 %v254_v45 }
 0x2f5   :  { %v233_v47 = vmul.f32 0.5, %v1002_v46 }
 0x2f7   :  { %v234_v48 = vadd.f32 0.5, %v233_v47 }
 0x2f9   :  { %v235_v49 = vsel %vm1175_vm4, %v1002_v46, %v234_v48 }
 0x2fa   :  { %v1004_v50 = vpop.eup %1003  ;;  %238 = vrot.lane.b32.xlu2 %v235_v49, %s1116_s1  ;;  %v236_v58 = vmul.f32 0.0, %v235_v49 }
 0x2fb   :  { %v256_v51 = vmul.f32 0.5, %v1004_v50 }
 0x2fd   :  { %v257_v52 = vadd.f32 0.5, %v256_v51 }
 0x2ff   :  { %v258_v53 = vsel %vm1175_vm4, %v1004_v50, %v257_v52 }
 0x300   :  { %v259_v61 = vmul.f32 %v258_v53, %v1183_v16 }
 0x302   :  { %261 = vrot.lane.b32.xlu2 %v258_v53, %s1116_s1 }
 0x354   :  { %v239_v54 = vpop.permute.xlu2 %238 }
 0x355   :  { %v241_v55 = vmul.f32 %v239_v54, %v235_v49 }
 0x357   :  { %243 = vrot.lane.b32.xlu0 %v241_v55, %s1117_s2 }
 0x35c   :  { %v262_v56 = vpop.permute.xlu2 %261 }
 0x35d   :  { %v264_v57 = vmul.f32 %v262_v56, %v258_v53 }
 0x35f   :  { %266 = vrot.lane.b32.xlu1 %v264_v57, %s1117_s2 }
 0x3c9   :  { %v244_v59 = vpop.permute.xlu0 %243 }
 0x3ca   :  { %v1314_v60 = vadd.f32 %v244_v59, %v236_v58  ;;  %v46_v59 = vld [vmem:[%s1537_s0 + $0x18] sm:$0xff] }
 0x3cb   :  { %967 = vmatmul.msk.f32.gmra.mxu0 %vm56_vm1, %v46_v59 }
 0x3cc   :  { %1005 = vtanh.f32 %v1314_v60 }
 0x3d1   :  { %v267_v62 = vpop.permute.xlu1 %266 }
 0x3d2   :  { %v1006_v63 = vpop.eup %1005  ;;  %v1318_v0 = vadd.f32 %v267_v62, %v259_v61 }
 0x3d3   :  { %249 = vrot.lane.b32.xlu2 %v1006_v63, %s1116_s1 }
 0x3d4   :  { %1007 = vtanh.f32 %v1318_v0 }
 0x3da   :  { %v1008_v1 = vpop.eup %1007 }
 0x3db   :  { %272 = vrot.lane.b32.xlu0 %v1008_v1, %s1116_s1 }
 0x42d   :  { %v250_v3 = vpop.permute.xlu2 %249 }
 0x42e   :  { %v252_v4 = vmul.f32 %v250_v3, %v235_v49 }
 0x430   :  { %281 = vrot.lane.b32.xlu2 %v252_v4, %s1116_s1 }
 0x448   :  { %v111_v63 = vpop.f32.mrf.mxu0 }
 0x44d   :  { %v273_v5 = vpop.permute.xlu0 %272 }
 0x44e   :  { %v275_v6 = vmul.f32 %v273_v5, %v258_v53 }
 0x450   :  { %277 = vrot.lane.b32.xlu1 %v275_v6, %s1117_s2 }
 0x48a   :  { %v282_v8 = vpop.permute.xlu2 %281 }
 0x4c2   :  { %v278_v10 = vpop.permute.xlu1 %277 }
 0x4c3   :  { %v284_v11 = vsel %vm182_vm5, %v278_v10, %v282_v8 }
 0x4c4   :  { %974 = vmatmul.msk.f32.vlgmr.msra.gmra.mxu3 %vm184_vm6, %v284_v11  ;;  %975 = vmatmul.msk.f32.vlgmr.msrb.gmra.mxu1 %vm184_vm6, %v284_v11 }
 0x4c5   :  { %587 = vmatpush.msra.mxu3 %v1187_v18  ;;  %607 = vmatpush.msrb.mxu1 %v1189_v19 }
 0x4c7   :  { %588 = vmatpush.msra.mxu3 %v1191_v20  ;;  %608 = vmatpush.msrb.mxu1 %v1195_v21 }
 0x4c9   :  { %589 = vmatpush.msra.mxu3 %v1197_v22  ;;  %609 = vmatpush.msrb.mxu1 %v1199_v23 }
 0x4cb   :  { %590 = vmatpush.msra.mxu3 %v1205_v24  ;;  %610 = vmatpush.msrb.mxu1 %v1207_v25 }
 0x4cd   :  { %591 = vmatpush.msra.mxu3 %v1213_v26  ;;  %611 = vmatpush.msrb.mxu1 %v1215_v27 }
 0x4cf   :  { %592 = vmatpush.msra.mxu3 %v1221_v28  ;;  %612 = vmatpush.msrb.mxu1 %v1223_v29 }
 0x4d1   :  { %593 = vmatpush.msra.mxu3 %v1229_v30  ;;  %613 = vmatpush.msrb.mxu1 %v1231_v31 }
 0x4d3   :  { %594 = vmatpush.msra.mxu3 %v1244_v34  ;;  %614 = vmatpush.msrb.mxu1 %v1246_v35 }
 0x541   :  { %v325_v14 = vpop.f32.mrf.mxu1 }
 0x542   :  { %v351_v15 = vadd.f32 %v325_v14, %v109_v13 }
 0x544   :  { %1009 = vtanh.f32 %v351_v15 }
 0x547   :  { %v305_v16 = vpop.f32.mrf.mxu3 }
 0x548   :  { %v328_v17 = vadd.f32 %v1302_v39, %v305_v16 }
 0x54a   :  { %v1010_v32 = vpop.eup %1009  ;;  %1011 = vtanh.f32 %v328_v17 }
 0x54b   :  { %v353_v33 = vmul.f32 0.5, %v1010_v32 }
 0x54d   :  { %v354_v36 = vadd.f32 0.5, %v353_v33 }
 0x54f   :  { %v355_v37 = vsel %vm1175_vm4, %v1010_v32, %v354_v36 }
 0x550   :  { %v1012_v38 = vpop.eup %1011  ;;  %358 = vrot.lane.b32.xlu1 %v355_v37, %s1116_s1  ;;  %v356_v51 = vmul.f32 %v355_v37, %v1318_v0  ;;  %v112_v0 = vadd.f32 %v1172_v2, %v111_v63 }
 0x551   :  { %v330_v40 = vmul.f32 0.5, %v1012_v38 }
 0x553   :  { %v331_v41 = vadd.f32 0.5, %v330_v40 }
 0x555   :  { %v332_v42 = vsel %vm1175_vm4, %v1012_v38, %v331_v41 }
 0x556   :  { %335 = vrot.lane.b32.xlu0 %v332_v42, %s1116_s1  ;;  %v333_v47 = vmul.f32 %v332_v42, %v1314_v60 }
 0x5c2   :  { %v359_v43 = vpop.permute.xlu1 %358 }
 0x5c3   :  { %v361_v44 = vmul.f32 %v359_v43, %v355_v37 }
 0x5c5   :  { %363 = vrot.lane.b32.xlu0 %v361_v44, %s1117_s2 }
 0x5c8   :  { %v336_v45 = vpop.permute.xlu0 %335 }
 0x5c9   :  { %v338_v46 = vmul.f32 %v336_v45, %v332_v42 }
 0x5cb   :  { %340 = vrot.lane.b32.xlu2 %v338_v46, %s1117_s2 }
 0x625   :  { %v341_v48 = vpop.permute.xlu2 %340 }
 0x626   :  { %v1359_v49 = vadd.f32 %v341_v48, %v333_v47  ;;  %v47_v48 = vld [vmem:[%s1537_s0 + $0x20] sm:$0xff] }
 0x627   :  { %968 = vmatmul.msk.f32.gmra.mxu0 %vm56_vm1, %v47_v48 }
 0x628   :  { %1013 = vtanh.f32 %v1359_v49 }
 0x62e   :  { %v1014_v50 = vpop.eup %1013 }
 0x62f   :  { %346 = vrot.lane.b32.xlu1 %v1014_v50, %s1116_s1 }
 0x637   :  { %v364_v52 = vpop.permute.xlu0 %363 }
 0x638   :  { %v366_v53 = vadd.f32 %v364_v52, %v356_v51 }
 0x63a   :  { %1015 = vtanh.f32 %v366_v53 }
 0x640   :  { %v1016_v54 = vpop.eup %1015 }
 0x641   :  { %369 = vrot.lane.b32.xlu2 %v1016_v54, %s1116_s1 }
 0x69b   :  { %v370_v55 = vpop.permute.xlu2 %369 }
 0x69c   :  { %v372_v56 = vmul.f32 %v370_v55, %v355_v37 }
 0x69e   :  { %374 = vrot.lane.b32.xlu0 %v372_v56, %s1117_s2 }
 0x6a1   :  { %v347_v57 = vpop.permute.xlu1 %346 }
 0x6a2   :  { %v349_v58 = vmul.f32 %v347_v57, %v332_v42 }
 0x6a4   :  { %378 = vrot.lane.b32.xlu1 %v349_v58, %s1116_s1 }
 0x710   :  { %v375_v60 = vpop.permute.xlu0 %374 }
 0x716   :  { %v379_v61 = vpop.permute.xlu1 %378 }
 0x717   :  { %v381_v62 = vsel %vm182_vm5, %v375_v60, %v379_v61 }
 0x718   :  { %976 = vmatmul.msk.f32.vlgmr.msrb.gmra.mxu2 %vm184_vm6, %v381_v62  ;;  %977 = vmatmul.msk.f32.vlgmr.msrb.gmra.mxu3 %vm184_vm6, %v381_v62 }
 0x719   :  { %684 = vmatpush.msrb.mxu2 %v1187_v18  ;;  %704 = vmatpush.msrb.mxu3 %v1189_v19 }
 0x71b   :  { %685 = vmatpush.msrb.mxu2 %v1191_v20  ;;  %705 = vmatpush.msrb.mxu3 %v1195_v21 }
 0x71d   :  { %686 = vmatpush.msrb.mxu2 %v1197_v22  ;;  %706 = vmatpush.msrb.mxu3 %v1199_v23 }
 0x71f   :  { %687 = vmatpush.msrb.mxu2 %v1205_v24  ;;  %707 = vmatpush.msrb.mxu3 %v1207_v25 }
 0x721   :  { %688 = vmatpush.msrb.mxu2 %v1213_v26  ;;  %708 = vmatpush.msrb.mxu3 %v1215_v27 }
 0x723   :  { %689 = vmatpush.msrb.mxu2 %v1221_v28  ;;  %709 = vmatpush.msrb.mxu3 %v1223_v29 }
 0x725   :  { %690 = vmatpush.msrb.mxu2 %v1229_v30  ;;  %710 = vmatpush.msrb.mxu3 %v1231_v31 }
 0x727   :  { %691 = vmatpush.msrb.mxu2 %v1244_v34  ;;  %711 = vmatpush.msrb.mxu3 %v1246_v35 }
 0x79b   :  { %v402_v1 = vpop.f32.mrf.mxu2  ;;  %v422_v3 = vpop.f32.mrf.mxu3 }
 0x79c   :  { %v425_v4 = vadd.f32 %v1302_v39, %v402_v1  ;;  %v448_v5 = vadd.f32 %v422_v3, %v112_v0  ;;  %v48_v3 = vld [vmem:[%s1537_s0 + $0x28] sm:$0xff] }
 0x79d   :  { %969 = vmatmul.msk.f32.gmra.mxu0 %vm56_vm1, %v48_v3 }
 0x79e   :  { %1017 = vtanh.f32 %v425_v4 }
 0x79f   :  { %1019 = vtanh.f32 %v448_v5 }
 0x7a4   :  { %v1018_v6 = vpop.eup %1017 }
 0x7a5   :  { %v1020_v7 = vpop.eup %1019  ;;  %v427_v8 = vmul.f32 0.5, %v1018_v6 }
 0x7a6   :  { %v450_v10 = vmul.f32 0.5, %v1020_v7 }
 0x7a7   :  { %v428_v11 = vadd.f32 0.5, %v427_v8 }
 0x7a8   :  { %v451_v12 = vadd.f32 0.5, %v450_v10 }
 0x7a9   :  { %v429_v13 = vsel %vm1175_vm4, %v1018_v6, %v428_v11 }
 0x7aa   :  { %v452_v14 = vsel %vm1175_vm4, %v1020_v7, %v451_v12  ;;  %432 = vrot.lane.b32.xlu2 %v429_v13, %s1116_s1  ;;  %v430_v33 = vmul.f32 %v429_v13, %v1359_v49 }
 0x7ab   :  { %455 = vrot.lane.b32.xlu0 %v452_v14, %s1116_s1  ;;  %v453_v37 = vmul.f32 %v452_v14, %v366_v53 }
 0x804   :  { %v433_v15 = vpop.permute.xlu2 %432 }
 0x805   :  { %v435_v16 = vmul.f32 %v433_v15, %v429_v13 }
 0x807   :  { %437 = vrot.lane.b32.xlu1 %v435_v16, %s1117_s2 }
 0x81d   :  { %v456_v17 = vpop.permute.xlu0 %455 }
 0x81e   :  { %v458_v32 = vmul.f32 %v456_v17, %v452_v14 }
 0x820   :  { %460 = vrot.lane.b32.xlu2 %v458_v32, %s1117_s2 }
 0x879   :  { %v438_v36 = vpop.permute.xlu1 %437 }
 0x87a   :  { %v1401_v38 = vadd.f32 %v438_v36, %v430_v33  ;;  %v461_v40 = vpop.permute.xlu2 %460 }
 0x87b   :  { %v463_v41 = vadd.f32 %v461_v40, %v453_v37 }
 0x87c   :  { %1021 = vtanh.f32 %v1401_v38 }
 0x87d   :  { %1023 = vtanh.f32 %v463_v41 }
 0x882   :  { %v1022_v42 = vpop.eup %1021 }
 0x883   :  { %v1024_v43 = vpop.eup %1023  ;;  %443 = vrot.lane.b32.xlu0 %v1022_v42, %s1116_s1 }
 0x884   :  { %466 = vrot.lane.b32.xlu1 %v1024_v43, %s1116_s1 }
 0x8f5   :  { %v444_v44 = vpop.permute.xlu0 %443 }
 0x8f6   :  { %v467_v45 = vpop.permute.xlu1 %466  ;;  %v446_v46 = vmul.f32 %v444_v44, %v429_v13 }
 0x8f7   :  { %v469_v47 = vmul.f32 %v467_v45, %v452_v14 }
 0x8f8   :  { %475 = vrot.lane.b32.xlu0 %v446_v46, %s1116_s1 }
 0x8f9   :  { %471 = vrot.lane.b32.xlu2 %v469_v47, %s1117_s2 }
 0x953   :  { %v472_v49 = vpop.permute.xlu2 %471 }
 0x96a   :  { %v476_v50 = vpop.permute.xlu0 %475 }
 0x96b   :  { %v478_v51 = vsel %vm182_vm5, %v472_v49, %v476_v50 }
 0x96c   :  { %978 = vmatmul.msk.f32.vlgmr.msra.gmra.mxu1 %vm184_vm6, %v478_v51  ;;  %979 = vmatmul.msk.f32.vlgmr.msra.gmra.mxu2 %vm184_vm6, %v478_v51 }
 0x96d   :  { %801 = vmatpush.msra.mxu1 %v1189_v19  ;;  %878 = vmatpush.msra.mxu2 %v1187_v18  ;;  %v114_v19 = vpop.f32.mrf.mxu0 }
 0x96f   :  { %802 = vmatpush.msra.mxu1 %v1195_v21  ;;  %879 = vmatpush.msra.mxu2 %v1191_v20  ;;  %v115_v21 = vadd.f32 %v1172_v2, %v114_v19 }
 0x971   :  { %803 = vmatpush.msra.mxu1 %v1199_v23  ;;  %880 = vmatpush.msra.mxu2 %v1197_v22 }
 0x973   :  { %804 = vmatpush.msra.mxu1 %v1207_v25  ;;  %881 = vmatpush.msra.mxu2 %v1205_v24 }
 0x975   :  { %805 = vmatpush.msra.mxu1 %v1215_v27  ;;  %882 = vmatpush.msra.mxu2 %v1213_v26  ;;  %v117_v7 = vpop.f32.mrf.mxu0 }
 0x976   :  { %v118_v8 = vadd.f32 %v1172_v2, %v117_v7 }
 0x977   :  { %806 = vmatpush.msra.mxu1 %v1223_v29  ;;  %883 = vmatpush.msra.mxu2 %v1221_v28 }
 0x979   :  { %807 = vmatpush.msra.mxu1 %v1231_v31  ;;  %884 = vmatpush.msra.mxu2 %v1229_v30 }
 0x97b   :  { %808 = vmatpush.msra.mxu1 %v1246_v35  ;;  %885 = vmatpush.msra.mxu2 %v1244_v34 }
 0x9e9   :  { %v499_v18 = vpop.f32.mrf.mxu1 }
 0x9ea   :  { %v522_v20 = vadd.f32 %v1302_v39, %v499_v18 }
 0x9ec   :  { %1025 = vtanh.f32 %v522_v20 }
 0x9ef   :  { %v519_v22 = vpop.f32.mrf.mxu2 }
 0x9f0   :  { %v545_v23 = vadd.f32 %v519_v22, %v115_v21  ;;  %v49_v21 = vld [vmem:[%s1537_s0 + $0x30] sm:$0xff] }
 0x9f1   :  { %970 = vmatmul.msk.f32.gmra.mxu0 %vm56_vm1, %v49_v21 }
 0x9f2   :  { %v1026_v24 = vpop.eup %1025  ;;  %1027 = vtanh.f32 %v545_v23 }
 0x9f3   :  { %v524_v25 = vmul.f32 0.5, %v1026_v24 }
 0x9f5   :  { %v525_v26 = vadd.f32 0.5, %v524_v25 }
 0x9f7   :  { %v526_v27 = vsel %vm1175_vm4, %v1026_v24, %v525_v26 }
 0x9f8   :  { %v1028_v28 = vpop.eup %1027  ;;  %529 = vrot.lane.b32.xlu1 %v526_v27, %s1116_s1  ;;  %v527_v58 = vmul.f32 %v526_v27, %v1401_v38 }
 0x9f9   :  { %v547_v29 = vmul.f32 0.5, %v1028_v28 }
 0x9fb   :  { %v548_v30 = vadd.f32 0.5, %v547_v29 }
 0x9fd   :  { %v549_v31 = vsel %vm1175_vm4, %v1028_v28, %v548_v30 }
 0x9fe   :  { %552 = vrot.lane.b32.xlu2 %v549_v31, %s1116_s1  ;;  %v550_v54 = vmul.f32 %v549_v31, %v463_v41 }
 0xa58   :  { %v553_v34 = vpop.permute.xlu2 %552 }
 0xa59   :  { %v555_v35 = vmul.f32 %v553_v34, %v549_v31 }
 0xa5b   :  { %557 = vrot.lane.b32.xlu1 %v555_v35, %s1117_s2 }
 0xa6a   :  { %v530_v52 = vpop.permute.xlu1 %529 }
 0xa6b   :  { %v532_v53 = vmul.f32 %v530_v52, %v526_v27 }
 0xa6d   :  { %534 = vrot.lane.b32.xlu0 %v532_v53, %s1117_s2 }
 0xa6e   :  { %v120_v25 = vpop.f32.mrf.mxu0 }
 0xa6f   :  { %v121_v26 = vadd.f32 %v1172_v2, %v120_v25 }
 0xacd   :  { %v558_v55 = vpop.permute.xlu1 %557 }
 0xace   :  { %v560_v56 = vadd.f32 %v558_v55, %v550_v54 }
 0xad0   :  { %1029 = vtanh.f32 %v560_v56 }
 0xad6   :  { %v1030_v57 = vpop.eup %1029 }
 0xad7   :  { %563 = vrot.lane.b32.xlu0 %v1030_v57, %s1116_s1 }
 0xadf   :  { %v535_v59 = vpop.permute.xlu0 %534 }
 0xae0   :  { %v537_v60 = vadd.f32 %v535_v59, %v527_v58 }
 0xae2   :  { %1031 = vtanh.f32 %v537_v60 }
 0xae8   :  { %v1032_v61 = vpop.eup %1031 }
 0xae9   :  { %540 = vrot.lane.b32.xlu2 %v1032_v61, %s1116_s1 }
 0xb43   :  { %v541_v62 = vpop.permute.xlu2 %540 }
 0xb44   :  { %v543_v63 = vmul.f32 %v541_v62, %v526_v27 }
 0xb46   :  { %572 = vrot.lane.b32.xlu2 %v543_v63, %s1116_s1 }
 0xb49   :  { %v564_v0 = vpop.permute.xlu0 %563 }
 0xb4a   :  { %v566_v1 = vmul.f32 %v564_v0, %v549_v31 }
 0xb4c   :  { %568 = vrot.lane.b32.xlu1 %v566_v1, %s1117_s2 }
 0xba0   :  { %v573_v4 = vpop.permute.xlu2 %572 }
 0xbbe   :  { %v569_v5 = vpop.permute.xlu1 %568 }
 0xbbf   :  { %v575_v6 = vsel %vm182_vm5, %v569_v5, %v573_v4 }
 0xbc0   :  { %980 = vmatmul.msk.f32.vlgmr.msra.gmra.mxu3 %vm184_vm6, %v575_v6  ;;  %981 = vmatmul.msk.f32.vlgmr.msrb.gmra.mxu1 %vm184_vm6, %v575_v6 }
 0xc3d   :  { %v616_v10 = vpop.f32.mrf.mxu1 }
 0xc3e   :  { %v642_v11 = vadd.f32 %v616_v10, %v118_v8 }
 0xc40   :  { %1033 = vtanh.f32 %v642_v11  ;;  %v50_v11 = vld [vmem:[%s1537_s0 + $0x38] sm:$0xff] }
 0xc41   :  { %971 = vmatmul.msk.f32.gmra.mxu0 %vm56_vm1, %v50_v11 }
 0xc43   :  { %v596_v12 = vpop.f32.mrf.mxu3 }
 0xc44   :  { %v619_v13 = vadd.f32 %v1302_v39, %v596_v12 }
 0xc46   :  { %v1034_v14 = vpop.eup %1033  ;;  %1035 = vtanh.f32 %v619_v13 }
 0xc47   :  { %v644_v15 = vmul.f32 0.5, %v1034_v14 }
 0xc49   :  { %v645_v16 = vadd.f32 0.5, %v644_v15 }
 0xc4b   :  { %v646_v17 = vsel %vm1175_vm4, %v1034_v14, %v645_v16 }
 0xc4c   :  { %v1036_v32 = vpop.eup %1035  ;;  %649 = vrot.lane.b32.xlu1 %v646_v17, %s1116_s1  ;;  %v647_v47 = vmul.f32 %v646_v17, %v560_v56 }
 0xc4d   :  { %v621_v33 = vmul.f32 0.5, %v1036_v32 }
 0xc4f   :  { %v622_v36 = vadd.f32 0.5, %v621_v33 }
 0xc51   :  { %v623_v37 = vsel %vm1175_vm4, %v1036_v32, %v622_v36 }
 0xc52   :  { %626 = vrot.lane.b32.xlu0 %v623_v37, %s1116_s1  ;;  %v624_v43 = vmul.f32 %v623_v37, %v537_v60 }
 0xcbe   :  { %v650_v38 = vpop.permute.xlu1 %649  ;;  %v123_v15 = vpop.f32.mrf.mxu0 }
 0xcbf   :  { %v652_v40 = vmul.f32 %v650_v38, %v646_v17  ;;  %v124_v16 = vadd.f32 %v1172_v2, %v123_v15 }
 0xcc1   :  { %654 = vrot.lane.b32.xlu0 %v652_v40, %s1117_s2 }
 0xcc4   :  { %v627_v41 = vpop.permute.xlu0 %626 }
 0xcc5   :  { %v629_v42 = vmul.f32 %v627_v41, %v623_v37 }
 0xcc7   :  { %631 = vrot.lane.b32.xlu2 %v629_v42, %s1117_s2 }
 0xd21   :  { %v632_v44 = vpop.permute.xlu2 %631 }
 0xd22   :  { %v634_v45 = vadd.f32 %v632_v44, %v624_v43 }
 0xd24   :  { %1037 = vtanh.f32 %v634_v45 }
 0xd2a   :  { %v1038_v46 = vpop.eup %1037 }
 0xd2b   :  { %637 = vrot.lane.b32.xlu1 %v1038_v46, %s1116_s1 }
 0xd33   :  { %v655_v48 = vpop.permute.xlu0 %654 }
 0xd34   :  { %v657_v49 = vadd.f32 %v655_v48, %v647_v47 }
 0xd36   :  { %1039 = vtanh.f32 %v657_v49 }
 0xd3c   :  { %v1040_v50 = vpop.eup %1039 }
 0xd3d   :  { %660 = vrot.lane.b32.xlu2 %v1040_v50, %s1116_s1 }
 0xd97   :  { %v661_v51 = vpop.permute.xlu2 %660 }
 0xd98   :  { %v663_v18 = vmul.f32 %v661_v51, %v646_v17 }
 0xd9a   :  { %665 = vrot.lane.b32.xlu0 %v663_v18, %s1117_s2 }
 0xd9d   :  { %v638_v19 = vpop.permute.xlu1 %637 }
 0xd9e   :  { %v640_v20 = vmul.f32 %v638_v19, %v623_v37 }
 0xda0   :  { %669 = vrot.lane.b32.xlu1 %v640_v20, %s1116_s1 }
 0xe0c   :  { %v666_v22 = vpop.permute.xlu0 %665 }
 0xe12   :  { %v670_v23 = vpop.permute.xlu1 %669 }
 0xe13   :  { %v672_v24 = vsel %vm182_vm5, %v666_v22, %v670_v23 }
 0xe14   :  { %982 = vmatmul.msk.f32.vlgmr.msrb.gmra.mxu2 %vm184_vm6, %v672_v24  ;;  %983 = vmatmul.msk.f32.vlgmr.msrb.gmra.mxu3 %vm184_vm6, %v672_v24 }
 0xe97   :  { %v693_v27 = vpop.f32.mrf.mxu2  ;;  %v713_v28 = vpop.f32.mrf.mxu3 }
 0xe98   :  { %v716_v29 = vadd.f32 %v1302_v39, %v693_v27  ;;  %v739_v30 = vadd.f32 %v713_v28, %v121_v26 }
 0xe9a   :  { %1041 = vtanh.f32 %v716_v29 }
 0xe9b   :  { %1043 = vtanh.f32 %v739_v30 }
 0xea0   :  { %v1042_v31 = vpop.eup %1041 }
 0xea1   :  { %v1044_v34 = vpop.eup %1043  ;;  %v718_v35 = vmul.f32 0.5, %v1042_v31 }
 0xea2   :  { %v741_v52 = vmul.f32 0.5, %v1044_v34 }
 0xea3   :  { %v719_v53 = vadd.f32 0.5, %v718_v35 }
 0xea4   :  { %v742_v54 = vadd.f32 0.5, %v741_v52 }
 0xea5   :  { %v720_v55 = vsel %vm1175_vm4, %v1042_v31, %v719_v53 }
 0xea6   :  { %v743_v56 = vsel %vm1175_vm4, %v1044_v34, %v742_v54  ;;  %723 = vrot.lane.b32.xlu2 %v720_v55, %s1116_s1  ;;  %v721_v61 = vmul.f32 %v720_v55, %v634_v45 }
 0xea7   :  { %746 = vrot.lane.b32.xlu0 %v743_v56, %s1116_s1  ;;  %v744_v63 = vmul.f32 %v743_v56, %v657_v49 }
 0xf00   :  { %v724_v57 = vpop.permute.xlu2 %723 }
 0xf01   :  { %v726_v58 = vmul.f32 %v724_v57, %v720_v55 }
 0xf03   :  { %728 = vrot.lane.b32.xlu1 %v726_v58, %s1117_s2 }
 0xf19   :  { %v747_v59 = vpop.permute.xlu0 %746 }
 0xf1a   :  { %v749_v60 = vmul.f32 %v747_v59, %v743_v56 }
 0xf1c   :  { %751 = vrot.lane.b32.xlu2 %v749_v60, %s1117_s2  ;;  %v913_v60 = vld [vmem:[%s1542_s5 + $0x8] sm:$0xff] }
 0xf75   :  { %v729_v62 = vpop.permute.xlu1 %728 }
 0xf76   :  { %v731_v0 = vadd.f32 %v729_v62, %v721_v61  ;;  %v752_v1 = vpop.permute.xlu2 %751  ;;  %v912_v61 = vld [vmem:[%s1542_s5] sm:$0xff] }
 0xf77   :  { %v754_v3 = vadd.f32 %v752_v1, %v744_v63  ;;  %v996_v1 = vld [vmem:[%s1543_s6] ss:$0 sm:$0xff] }
 0xf78   :  { %1045 = vtanh.f32 %v731_v0 }
 0xf79   :  { %1047 = vtanh.f32 %v754_v3 }
 0xf7e   :  { %v1046_v4 = vpop.eup %1045 }
 0xf7f   :  { %v1048_v5 = vpop.eup %1047  ;;  %734 = vrot.lane.b32.xlu0 %v1046_v4, %s1116_s1 }
 0xf80   :  { %757 = vrot.lane.b32.xlu1 %v1048_v5, %s1116_s1 }
 0xff1   :  { %v735_v6 = vpop.permute.xlu0 %734 }
 0xff2   :  { %v758_v7 = vpop.permute.xlu1 %757  ;;  %v737_v8 = vmul.f32 %v735_v6, %v720_v55 }
 0xff3   :  { %v760_v10 = vmul.f32 %v758_v7, %v743_v56 }
 0xff4   :  { %766 = vrot.lane.b32.xlu0 %v737_v8, %s1116_s1 }
 0xff5   :  { %762 = vrot.lane.b32.xlu2 %v760_v10, %s1117_s2 }
0x104f   :  { %v763_v12 = vpop.permute.xlu2 %762 }
0x1066   :  { %v767_v13 = vpop.permute.xlu0 %766 }
0x1067   :  { %v769_v14 = vsel %vm182_vm5, %v763_v12, %v767_v13 }
0x1068   :  { %984 = vmatmul.msk.f32.vlgmr.msrb.gmra.mxu0 %vm184_vm6, %v769_v14  ;;  %985 = vmatmul.msk.f32.vlgmr.msra.gmra.mxu1 %vm184_vm6, %v769_v14 }
0x10e5   :  { %v790_v17 = vpop.f32.mrf.mxu0  ;;  %v810_v32 = vpop.f32.mrf.mxu1 }
0x10e6   :  { %v813_v33 = vadd.f32 %v1302_v39, %v790_v17  ;;  %v836_v36 = vadd.f32 %v810_v32, %v124_v16 }
0x10e8   :  { %1049 = vtanh.f32 %v813_v33 }
0x10e9   :  { %1051 = vtanh.f32 %v836_v36 }
0x10ee   :  { %v1050_v37 = vpop.eup %1049 }
0x10ef   :  { %v1052_v38 = vpop.eup %1051  ;;  %v815_v40 = vmul.f32 0.5, %v1050_v37 }
0x10f0   :  { %v838_v41 = vmul.f32 0.5, %v1052_v38 }
0x10f1   :  { %v816_v42 = vadd.f32 0.5, %v815_v40 }
0x10f2   :  { %v839_v43 = vadd.f32 0.5, %v838_v41 }
0x10f3   :  { %v817_v44 = vsel %vm1175_vm4, %v1050_v37, %v816_v42 }
0x10f4   :  { %v840_v45 = vsel %vm1175_vm4, %v1052_v38, %v839_v43  ;;  %820 = vrot.lane.b32.xlu1 %v817_v44, %s1116_s1  ;;  %v818_v19 = vmul.f32 %v817_v44, %v731_v0 }
0x10f5   :  { %843 = vrot.lane.b32.xlu2 %v840_v45, %s1116_s1  ;;  %v841_v49 = vmul.f32 %v840_v45, %v754_v3 }
0x114f   :  { %v844_v2 = vpop.permute.xlu2 %843 }
0x1150   :  { %v846_v46 = vmul.f32 %v844_v2, %v840_v45 }
0x1152   :  { %848 = vrot.lane.b32.xlu1 %v846_v46, %s1117_s2 }
0x1166   :  { %v821_v47 = vpop.permute.xlu1 %820 }
0x1167   :  { %v823_v48 = vmul.f32 %v821_v47, %v817_v44 }
0x1169   :  { %825 = vrot.lane.b32.xlu0 %v823_v48, %s1117_s2 }
0x11c4   :  { %v849_v50 = vpop.permute.xlu1 %848 }
0x11c5   :  { %v851_v51 = vadd.f32 %v849_v50, %v841_v49 }
0x11c7   :  { %1053 = vtanh.f32 %v851_v51 }
0x11cd   :  { %v1054_v18 = vpop.eup %1053 }
0x11ce   :  { %854 = vrot.lane.b32.xlu0 %v1054_v18, %s1116_s1 }
0x11db   :  { %v826_v20 = vpop.permute.xlu0 %825 }
0x11dc   :  { %v828_v21 = vadd.f32 %v826_v20, %v818_v19 }
0x11de   :  { %1055 = vtanh.f32 %v828_v21 }
0x11e4   :  { %v1056_v22 = vpop.eup %1055 }
0x11e5   :  { %831 = vrot.lane.b32.xlu2 %v1056_v22, %s1116_s1 }
0x123f   :  { %v832_v23 = vpop.permute.xlu2 %831 }
0x1240   :  { %v855_v24 = vpop.permute.xlu0 %854  ;;  %v834_v25 = vmul.f32 %v832_v23, %v817_v44 }
0x1241   :  { %v857_v26 = vmul.f32 %v855_v24, %v840_v45 }
0x1242   :  { %863 = vrot.lane.b32.xlu2 %v834_v25, %s1116_s1 }
0x1243   :  { %859 = vrot.lane.b32.xlu1 %v857_v26, %s1117_s2 }
0x129c   :  { %v864_v27 = vpop.permute.xlu2 %863 }
0x12b5   :  { %v860_v28 = vpop.permute.xlu1 %859 }
0x12b6   :  { %v866_v29 = vsel %vm182_vm5, %v860_v28, %v864_v27 }
0x12b7   :  { %986 = vmatmul.msk.f32.vlgmr.msra.gmra.mxu2 %vm184_vm6, %v866_v29 }
0x133a   :  { %v887_v30 = vpop.f32.mrf.mxu2 }
0x133b   :  { %v890_v31 = vadd.f32 %v1302_v39, %v887_v30  ;;  %v915_v39 = vld [vmem:[%s1542_s5 + $0x18] sm:$0xff] }
0x133c   :  { %937 = vmatpush.msra.mxu3 %v915_v39 }
0x133d   :  { %1057 = vtanh.f32 %v890_v31 }
0x133e   :  { %938 = vmatpush.msra.mxu3 %v914_v9 }
0x1340   :  { %939 = vmatpush.msra.mxu3 %v913_v60 }
0x1342   :  { %940 = vmatpush.msra.mxu3 %v912_v61 }
0x1343   :  { %v1058_v34 = vpop.eup %1057 }
0x1344   :  { %v892_v35 = vmul.f32 0.5, %v1058_v34 }
0x1346   :  { %v893_v52 = vadd.f32 0.5, %v892_v35 }
0x1348   :  { %v894_v53 = vsel %vm1175_vm4, %v1058_v34, %v893_v52 }
0x1349   :  { %897 = vrot.lane.b32.xlu0 %v894_v53, %s1116_s1  ;;  %v895_v56 = vmul.f32 %v894_v53, %v828_v21 }
0x13bb   :  { %v898_v54 = vpop.permute.xlu0 %897 }
0x13bc   :  { %v900_v55 = vmul.f32 %v898_v54, %v894_v53 }
0x13be   :  { %902 = vrot.lane.b32.xlu1 %v900_v55, %s1117_s2 }
0x1430   :  { %v903_v57 = vpop.permute.xlu1 %902 }
0x1431   :  { %v905_v58 = vadd.f32 %v903_v57, %v895_v56 }
0x1433   :  { %1059 = vtanh.f32 %v905_v58 }
0x1439   :  { %v1060_v59 = vpop.eup %1059 }
0x143a   :  { %908 = vrot.lane.b32.xlu2 %v1060_v59, %s1116_s1  ;;  %s1118_s1 = smov [#allocation6]  }
0x143b   :  { %s951_s13 = sshll.u32 %s1118_s1, 4  ;;  %s952_s13 = int_to_ptr.vmem [resolvable:$true] %s951_s13 }
0x1494   :  { %v909_v62 = vpop.permute.xlu2 %908 }
0x1495   :  { %v911_v63 = vmul.f32 %v909_v62, %v894_v53 }
0x1497   :  { %921 = vrot.lane.b32.xlu0 %v911_v63, %s1117_s2 }
0x1509   :  { %v922_v0 = vpop.permute.xlu0 %921 }
0x150a   :  { %987 = vmatmul.msk.f32.vlgmr.msra.gmra.mxu3 %vm182_vm5, %v922_v0 }
0x158d   :  { %v942_v3 = vpop.f32.mrf.mxu3 }
0x158e   :  { %v943_v4 = vadd.f32 %v996_v1, %v942_v3 }
0x1590   :  { %945 = vst [vmem:[#allocation6] sm:$0xff] %v943_v4 }
0x1591   :  { %956 = dma.vmem_to_hbm [thread:$0]  %s952_s13, 128, %s954_s16, [#allocation5]  }
0x1592   :  { %1111 = dma.done.wait [#allocation5], 128  }
0x1593   :  { %1112 = vsyncadd [#allocation5], 4294967168 }
0x1594   :  { %961 = vsyncpa [#allocation4], 1 }
0x1595   :  { %962 = vsyncpa [#allocation5], 1 }

</bundles_post_ra>
